<compile_context>
chip_gen: v7x
topology: tpu7x:2x2x1
jax: 0.10.0
libtpu: 0.0.40
codegen_flags: <defaults>
</compile_context>

<pallas_src>
from functools import partial

import jax
import jax.numpy as jnp
from jax.experimental import pallas as pl
from jax.experimental.pallas import tpu as pltpu


def rnn_fc_kernel(x_ref, h0_ref,
                  wih0_ref, whh0_ref, b0_ref,
                  wih1_ref, whh1_ref, b1_ref,
                  wfc_ref, bfc_ref,
                  out_ref, hT_ref,
                  hall_ref):
    """One program: hoisted input projection -> unrolled recurrence -> hoisted FC."""
    T, Bp, Ip = x_ref.shape
    Hp = whh0_ref.shape[0]
    Cp = out_ref.shape[-1]

    # --- Prologue: layer-0 input projection as ONE big MXU matmul (+ folded b0).
    # Kept as a value (no VMEM round trip; T*Bp*Hp is tiny), sliced statically below.
    x_flat = x_ref[...].reshape(T * Bp, Ip)                      # layout-preserving
    xp = jnp.dot(x_flat, wih0_ref[...],
                 preferred_element_type=jnp.float32) + b0_ref[...]   # (T*Bp, Hp)

    whh0 = whh0_ref[...]                                         # (Hp, Hp)
    wih1 = wih1_ref[...]                                         # (Hp, Hp)
    whh1 = whh1_ref[...]                                         # (Hp, Hp)
    b1 = jnp.broadcast_to(b1_ref[...], (Bp, Hp))                 # hoisted broadcast

    h0 = h0_ref[0]                                               # (Bp, Hp)
    h1 = h0_ref[1]                                               # (Bp, Hp)

    # --- Recurrence: statically unrolled time loop (T small & static) so xp slices
    # and hall stores are static, and the independent layer-1 matmul can overlap
    # with the layer-0 recurrent matmul + tanh on the serial chain.
    for t in range(T):
        # Independent of h0n -> off the dependent chain.
        h1_ind = jnp.dot(h1, whh1, preferred_element_type=jnp.float32) + b1
        # Layer 0: only the recurrent matmul remains on the serial chain.
        h0 = jnp.tanh(xp[t * Bp:(t + 1) * Bp, :]
                      + jnp.dot(h0, whh0, preferred_element_type=jnp.float32))
        # Layer 1: dependent matmul is 128-deep (was 256 when fused with concat).
        h1 = jnp.tanh(jnp.dot(h0, wih1, preferred_element_type=jnp.float32) + h1_ind)
        hall_ref[t] = h1                                         # off the critical path

    hT_ref[0] = h0
    hT_ref[1] = h1

    # --- Epilogue: FC head as ONE big MXU matmul over the whole (T*Bp, Hp) slab ---
    hall = hall_ref[...].reshape(T * Bp, Hp)
    y = jnp.dot(hall, wfc_ref[...],
                preferred_element_type=jnp.float32) + bfc_ref[...]
    out_ref[...] = y.reshape(T, Bp, Cp)


def _round_up(n, m):
    return ((n + m - 1) // m) * m


def _pad_axis(a, axis, target):
    pad = target - a.shape[axis]
    if pad <= 0:
        return a
    widths = [(0, 0)] * a.ndim
    widths[axis] = (0, pad)
    return jnp.pad(a, widths)


def prepare_params(params, input_size, hidden_size, num_classes):
    """One-time weight prep (transpose / zero-pad / bias-fold).

    Call ONCE and cache the result; keeping this out of the per-call path removes
    ~10 XLA ops of weight reshuffling from every forward call.
    """
    I, H, C = input_size, hidden_size, num_classes
    Ip = _round_up(I, 128)
    Hp = _round_up(H, 128)
    Cp = _round_up(C, 128)
    prepped = {
        "wih0": _pad_axis(_pad_axis(params["W_ih_l0"].T, 0, Ip), 1, Hp),   # (Ip, Hp)
        "whh0": _pad_axis(_pad_axis(params["W_hh_l0"].T, 0, Hp), 1, Hp),   # (Hp, Hp)
        "b0":   _pad_axis((params["b_ih_l0"] + params["b_hh_l0"])[None, :], 1, Hp),
        "wih1": _pad_axis(_pad_axis(params["W_ih_l1"].T, 0, Hp), 1, Hp),   # (Hp, Hp)
        "whh1": _pad_axis(_pad_axis(params["W_hh_l1"].T, 0, Hp), 1, Hp),   # (Hp, Hp)
        "b1":   _pad_axis((params["b_ih_l1"] + params["b_hh_l1"])[None, :], 1, Hp),
        "wfc":  _pad_axis(_pad_axis(params["W_fc"].T, 0, Hp), 1, Cp),      # (Hp, Cp)
        "bfc":  _pad_axis(params["b_fc"][None, :], 1, Cp),                 # (1, Cp)
    }
    # Materialize once so the per-call jit sees plain device arrays.
    return jax.tree_util.tree_map(jnp.asarray, prepped)


@partial(jax.jit, static_argnames=("num_classes",))
def rnn_model_forward(x, h, prepped, num_classes):
    """x: (B, T, I) f32, h: (L=2, B, H) f32, prepped: output of prepare_params.
    Returns (out, hT): out (B*T, C), hT (L, B, H) -- RNNModel.forward semantics."""
    B, T, I = x.shape
    L, _, H = h.shape
    C = num_classes

    Bp = _round_up(max(B, 8), 8)     # sublane padding
    Ip = prepped["wih0"].shape[0]    # lane padding (done once in prepare_params)
    Hp = prepped["whh0"].shape[0]
    Cp = prepped["wfc"].shape[1]

    # Per-call glue is now just: time-major transpose + zero-pad of x and h.
    x_tbi = _pad_axis(_pad_axis(jnp.transpose(x, (1, 0, 2)), 1, Bp), 2, Ip)  # (T,Bp,Ip)
    h_pad = _pad_axis(_pad_axis(h, 1, Bp), 2, Hp)                            # (L,Bp,Hp)

    vmem = pl.BlockSpec(memory_space=pltpu.MemorySpace.VMEM)
    out_tbc, hT_pad = pl.pallas_call(
        rnn_fc_kernel,
        out_shape=(jax.ShapeDtypeStruct((T, Bp, Cp), jnp.float32),
                   jax.ShapeDtypeStruct((L, Bp, Hp), jnp.float32)),
        in_specs=[vmem] * 10,
        out_specs=(vmem, vmem),
        scratch_shapes=[pltpu.VMEM((T, Bp, Hp), jnp.float32)],   # h1 history slab
    )(x_tbi, h_pad,
      prepped["wih0"], prepped["whh0"], prepped["b0"],
      prepped["wih1"], prepped["whh1"], prepped["b1"],
      prepped["wfc"], prepped["bfc"])

    # Cp == multiple of 128 keeps this transpose lane-dense; slice off padding.
    out = jnp.transpose(out_tbc, (1, 0, 2))[:B, :, :C].reshape(B * T, C)
    hT = hT_pad[:, :B, :H]
    return out, hT


def init_params(key, input_size, hidden_size, num_classes):
    """Deterministic init matching PyTorch shapes (uniform(-1/sqrt(H), 1/sqrt(H)))."""
    H, I, C = hidden_size, input_size, num_classes
    k = 1.0 / jnp.sqrt(jnp.float32(H))
    names_shapes = [
        ("W_ih_l0", (H, I)), ("W_hh_l0", (H, H)), ("b_ih_l0", (H,)), ("b_hh_l0", (H,)),
        ("W_ih_l1", (H, H)), ("W_hh_l1", (H, H)), ("b_ih_l1", (H,)), ("b_hh_l1", (H,)),
        ("W_fc", (C, H)), ("b_fc", (C,)),
    ]
    params = {}
    keys = jax.random.split(key, len(names_shapes))
    for sub, (name, shape) in zip(keys, names_shapes):
        params[name] = jax.random.uniform(sub, shape, jnp.float32, -k, k)
    return params


def reference_forward(x, h, params):
    """Pure-JAX reference (matches PyTorch nn.RNN(tanh) + Linear semantics)."""
    B, T, I = x.shape
    h0, h1 = h[0], h[1]
    outs = []
    for t in range(T):
        x_t = x[:, t, :]
        h0 = jnp.tanh(x_t @ params["W_ih_l0"].T + params["b_ih_l0"]
                      + h0 @ params["W_hh_l0"].T + params["b_hh_l0"])
        h1 = jnp.tanh(h0 @ params["W_ih_l1"].T + params["b_ih_l1"]
                      + h1 @ params["W_hh_l1"].T + params["b_hh_l1"])
        outs.append(h1)
    out = jnp.stack(outs, axis=1)                       # (B, T, H)
    out = out.reshape(B * T, -1) @ params["W_fc"].T + params["b_fc"]
    hT = jnp.stack([h0, h1], axis=0)
    return out, hT


if __name__ == "__main__":
    # Small shapes consistent with the module: char-vocab input, 2-layer hidden RNN.
    B, T = 2, 8
    input_size = 16      # len(chars)
    hidden_size = 64     # matches the module spec
    num_layers = 2
    num_classes = 16

    key = jax.random.PRNGKey(0)
    kx, kp = jax.random.split(key)
    x = jax.random.normal(kx, (B, T, input_size), jnp.float32)
    h = jnp.zeros((num_layers, B, hidden_size), jnp.float32)   # init_hidden
    params = init_params(kp, input_size, hidden_size, num_classes)

    # One-time parameter prep (cached outside the per-call path).
    prepped = prepare_params(params, input_size, hidden_size, num_classes)
    prepped = jax.block_until_ready(prepped)

    out, hT = rnn_model_forward(x, h, prepped, num_classes)
    out = jax.block_until_ready(out)
    hT = jax.block_until_ready(hT)

    out_ref, hT_ref = reference_forward(x, h, params)
    assert out.shape == (B * T, num_classes)
    assert hT.shape == (num_layers, B, hidden_size)
    assert jnp.allclose(out, out_ref, atol=1e-4, rtol=1e-4)
    assert jnp.allclose(hT, hT_ref, atol=1e-4, rtol=1e-4)

    print("KERNEL_OK")
</pallas_src>

<mosaic_0001>
module attributes {stable_mosaic.version = 11 : i64} {
  func.func @rnn_fc_kernel(%arg0: memref<8x8x128xf32, #tpu.memory_space<vmem>>, %arg1: memref<2x8x128xf32, #tpu.memory_space<vmem>>, %arg2: memref<128x128xf32, #tpu.memory_space<vmem>>, %arg3: memref<128x128xf32, #tpu.memory_space<vmem>>, %arg4: memref<1x128xf32, #tpu.memory_space<vmem>>, %arg5: memref<128x128xf32, #tpu.memory_space<vmem>>, %arg6: memref<128x128xf32, #tpu.memory_space<vmem>>, %arg7: memref<1x128xf32, #tpu.memory_space<vmem>>, %arg8: memref<128x128xf32, #tpu.memory_space<vmem>>, %arg9: memref<1x128xf32, #tpu.memory_space<vmem>>, %arg10: memref<8x8x128xf32, #tpu.memory_space<vmem>>, %arg11: memref<2x8x128xf32, #tpu.memory_space<vmem>>, %arg12: memref<8x8x128xf32, #tpu.memory_space<vmem>>) attributes {dimension_semantics = [], scalar_prefetch = 0 : i64, scratch_operands = 1 : i64, tpu.core_type = #tpu.core_type<tc>} {
    %c0 = arith.constant 0 : index
    %c0_0 = arith.constant 0 : index
    %c0_1 = arith.constant 0 : index
    %0 = vector.load %arg0[%c0, %c0_0, %c0_1] : memref<8x8x128xf32, #tpu.memory_space<vmem>>, vector<8x8x128xf32>
    %1 = vector.shape_cast %0 : vector<8x8x128xf32> to vector<64x128xf32>
    %c0_2 = arith.constant 0 : index
    %c0_3 = arith.constant 0 : index
    %2 = vector.load %arg2[%c0_2, %c0_3] : memref<128x128xf32, #tpu.memory_space<vmem>>, vector<128x128xf32>
    %cst = arith.constant dense<0.000000e+00> : vector<64x128xf32>
    %3 = tpu.matmul %1, %2, %cst {dimension_numbers = #tpu.dot_dimension_numbers<[1], [0], [0], [1], [0, 0, 1, 1], [], []>} : vector<64x128xf32>, vector<128x128xf32>, vector<64x128xf32> -> vector<64x128xf32>
    %c0_4 = arith.constant 0 : index
    %c0_5 = arith.constant 0 : index
    %4 = vector.load %arg4[%c0_4, %c0_5] : memref<1x128xf32, #tpu.memory_space<vmem>>, vector<1x128xf32>
    %5 = vector.broadcast %4 : vector<1x128xf32> to vector<64x128xf32>
    %6 = arith.addf %3, %5 : vector<64x128xf32>
    %c0_6 = arith.constant 0 : index
    %c0_7 = arith.constant 0 : index
    %7 = vector.load %arg3[%c0_6, %c0_7] : memref<128x128xf32, #tpu.memory_space<vmem>>, vector<128x128xf32>
    %c0_8 = arith.constant 0 : index
    %c0_9 = arith.constant 0 : index
    %8 = vector.load %arg5[%c0_8, %c0_9] : memref<128x128xf32, #tpu.memory_space<vmem>>, vector<128x128xf32>
    %c0_10 = arith.constant 0 : index
    %c0_11 = arith.constant 0 : index
    %9 = vector.load %arg6[%c0_10, %c0_11] : memref<128x128xf32, #tpu.memory_space<vmem>>, vector<128x128xf32>
    %c0_12 = arith.constant 0 : index
    %c0_13 = arith.constant 0 : index
    %10 = vector.load %arg7[%c0_12, %c0_13] : memref<1x128xf32, #tpu.memory_space<vmem>>, vector<1x128xf32>
    %11 = vector.shape_cast %10 : vector<1x128xf32> to vector<1x128xf32>
    %12 = vector.broadcast %11 : vector<1x128xf32> to vector<8x128xf32>
    %c0_14 = arith.constant 0 : index
    %c0_15 = arith.constant 0 : index
    %c0_16 = arith.constant 0 : index
    %13 = vector.load %arg1[%c0_14, %c0_15, %c0_16] : memref<2x8x128xf32, #tpu.memory_space<vmem>>, vector<1x8x128xf32>
    %14 = vector.shape_cast %13 : vector<1x8x128xf32> to vector<8x128xf32>
    %c1 = arith.constant 1 : index
    %c0_17 = arith.constant 0 : index
    %c0_18 = arith.constant 0 : index
    %15 = vector.load %arg1[%c1, %c0_17, %c0_18] : memref<2x8x128xf32, #tpu.memory_space<vmem>>, vector<1x8x128xf32>
    %16 = vector.shape_cast %15 : vector<1x8x128xf32> to vector<8x128xf32>
    %cst_19 = arith.constant dense<0.000000e+00> : vector<8x128xf32>
    %17 = tpu.matmul %16, %9, %cst_19 {dimension_numbers = #tpu.dot_dimension_numbers<[1], [0], [0], [1], [0, 0, 1, 1], [], []>} : vector<8x128xf32>, vector<128x128xf32>, vector<8x128xf32> -> vector<8x128xf32>
    %18 = arith.addf %17, %12 : vector<8x128xf32>
    %19 = vector.extract_strided_slice %6 {offsets = [0, 0], sizes = [8, 128], strides = [1, 1]} : vector<64x128xf32> to vector<8x128xf32>
    %cst_20 = arith.constant dense<0.000000e+00> : vector<8x128xf32>
    %20 = tpu.matmul %14, %7, %cst_20 {dimension_numbers = #tpu.dot_dimension_numbers<[1], [0], [0], [1], [0, 0, 1, 1], [], []>} : vector<8x128xf32>, vector<128x128xf32>, vector<8x128xf32> -> vector<8x128xf32>
    %21 = arith.addf %19, %20 : vector<8x128xf32>
    %22 = math.tanh %21 : vector<8x128xf32>
    %cst_21 = arith.constant dense<0.000000e+00> : vector<8x128xf32>
    %23 = tpu.matmul %22, %8, %cst_21 {dimension_numbers = #tpu.dot_dimension_numbers<[1], [0], [0], [1], [0, 0, 1, 1], [], []>} : vector<8x128xf32>, vector<128x128xf32>, vector<8x128xf32> -> vector<8x128xf32>
    %24 = arith.addf %23, %18 : vector<8x128xf32>
    %25 = math.tanh %24 : vector<8x128xf32>
    %c0_22 = arith.constant 0 : index
    %c0_23 = arith.constant 0 : index
    %c0_24 = arith.constant 0 : index
    %26 = vector.load %arg12[%c0_22, %c0_23, %c0_24] : memref<8x8x128xf32, #tpu.memory_space<vmem>>, vector<1x8x128xf32>
    %27 = vector.shape_cast %26 : vector<1x8x128xf32> to vector<8x128xf32>
    %28 = vector.shape_cast %25 : vector<8x128xf32> to vector<1x8x128xf32>
    tpu.vector_store %arg12[%c0_22, %c0_23, %c0_24], %28 {strides = array<i32>} : memref<8x8x128xf32, #tpu.memory_space<vmem>>, vector<1x8x128xf32>,
    %cst_25 = arith.constant dense<0.000000e+00> : vector<8x128xf32>
    %29 = tpu.matmul %25, %9, %cst_25 {dimension_numbers = #tpu.dot_dimension_numbers<[1], [0], [0], [1], [0, 0, 1, 1], [], []>} : vector<8x128xf32>, vector<128x128xf32>, vector<8x128xf32> -> vector<8x128xf32>
    %30 = arith.addf %29, %12 : vector<8x128xf32>
    %31 = vector.extract_strided_slice %6 {offsets = [8, 0], sizes = [8, 128], strides = [1, 1]} : vector<64x128xf32> to vector<8x128xf32>
    %cst_26 = arith.constant dense<0.000000e+00> : vector<8x128xf32>
    %32 = tpu.matmul %22, %7, %cst_26 {dimension_numbers = #tpu.dot_dimension_numbers<[1], [0], [0], [1], [0, 0, 1, 1], [], []>} : vector<8x128xf32>, vector<128x128xf32>, vector<8x128xf32> -> vector<8x128xf32>
    %33 = arith.addf %31, %32 : vector<8x128xf32>
    %34 = math.tanh %33 : vector<8x128xf32>
    %cst_27 = arith.constant dense<0.000000e+00> : vector<8x128xf32>
    %35 = tpu.matmul %34, %8, %cst_27 {dimension_numbers = #tpu.dot_dimension_numbers<[1], [0], [0], [1], [0, 0, 1, 1], [], []>} : vector<8x128xf32>, vector<128x128xf32>, vector<8x128xf32> -> vector<8x128xf32>
    %36 = arith.addf %35, %30 : vector<8x128xf32>
    %37 = math.tanh %36 : vector<8x128xf32>
    %c1_28 = arith.constant 1 : index
    %c0_29 = arith.constant 0 : index
    %c0_30 = arith.constant 0 : index
    %38 = vector.load %arg12[%c1_28, %c0_29, %c0_30] : memref<8x8x128xf32, #tpu.memory_space<vmem>>, vector<1x8x128xf32>
    %39 = vector.shape_cast %38 : vector<1x8x128xf32> to vector<8x128xf32>
    %40 = vector.shape_cast %37 : vector<8x128xf32> to vector<1x8x128xf32>
    tpu.vector_store %arg12[%c1_28, %c0_29, %c0_30], %40 {strides = array<i32>} : memref<8x8x128xf32, #tpu.memory_space<vmem>>, vector<1x8x128xf32>,
    %cst_31 = arith.constant dense<0.000000e+00> : vector<8x128xf32>
    %41 = tpu.matmul %37, %9, %cst_31 {dimension_numbers = #tpu.dot_dimension_numbers<[1], [0], [0], [1], [0, 0, 1, 1], [], []>} : vector<8x128xf32>, vector<128x128xf32>, vector<8x128xf32> -> vector<8x128xf32>
    %42 = arith.addf %41, %12 : vector<8x128xf32>
    %43 = vector.extract_strided_slice %6 {offsets = [16, 0], sizes = [8, 128], strides = [1, 1]} : vector<64x128xf32> to vector<8x128xf32>
    %cst_32 = arith.constant dense<0.000000e+00> : vector<8x128xf32>
    %44 = tpu.matmul %34, %7, %cst_32 {dimension_numbers = #tpu.dot_dimension_numbers<[1], [0], [0], [1], [0, 0, 1, 1], [], []>} : vector<8x128xf32>, vector<128x128xf32>, vector<8x128xf32> -> vector<8x128xf32>
    %45 = arith.addf %43, %44 : vector<8x128xf32>
    %46 = math.tanh %45 : vector<8x128xf32>
    %cst_33 = arith.constant dense<0.000000e+00> : vector<8x128xf32>
    %47 = tpu.matmul %46, %8, %cst_33 {dimension_numbers = #tpu.dot_dimension_numbers<[1], [0], [0], [1], [0, 0, 1, 1], [], []>} : vector<8x128xf32>, vector<128x128xf32>, vector<8x128xf32> -> vector<8x128xf32>
    %48 = arith.addf %47, %42 : vector<8x128xf32>
    %49 = math.tanh %48 : vector<8x128xf32>
    %c2 = arith.constant 2 : index
    %c0_34 = arith.constant 0 : index
    %c0_35 = arith.constant 0 : index
    %50 = vector.load %arg12[%c2, %c0_34, %c0_35] : memref<8x8x128xf32, #tpu.memory_space<vmem>>, vector<1x8x128xf32>
    %51 = vector.shape_cast %50 : vector<1x8x128xf32> to vector<8x128xf32>
    %52 = vector.shape_cast %49 : vector<8x128xf32> to vector<1x8x128xf32>
    tpu.vector_store %arg12[%c2, %c0_34, %c0_35], %52 {strides = array<i32>} : memref<8x8x128xf32, #tpu.memory_space<vmem>>, vector<1x8x128xf32>,
    %cst_36 = arith.constant dense<0.000000e+00> : vector<8x128xf32>
    %53 = tpu.matmul %49, %9, %cst_36 {dimension_numbers = #tpu.dot_dimension_numbers<[1], [0], [0], [1], [0, 0, 1, 1], [], []>} : vector<8x128xf32>, vector<128x128xf32>, vector<8x128xf32> -> vector<8x128xf32>
    %54 = arith.addf %53, %12 : vector<8x128xf32>
    %55 = vector.extract_strided_slice %6 {offsets = [24, 0], sizes = [8, 128], strides = [1, 1]} : vector<64x128xf32> to vector<8x128xf32>
    %cst_37 = arith.constant dense<0.000000e+00> : vector<8x128xf32>
    %56 = tpu.matmul %46, %7, %cst_37 {dimension_numbers = #tpu.dot_dimension_numbers<[1], [0], [0], [1], [0, 0, 1, 1], [], []>} : vector<8x128xf32>, vector<128x128xf32>, vector<8x128xf32> -> vector<8x128xf32>
    %57 = arith.addf %55, %56 : vector<8x128xf32>
    %58 = math.tanh %57 : vector<8x128xf32>
    %cst_38 = arith.constant dense<0.000000e+00> : vector<8x128xf32>
    %59 = tpu.matmul %58, %8, %cst_38 {dimension_numbers = #tpu.dot_dimension_numbers<[1], [0], [0], [1], [0, 0, 1, 1], [], []>} : vector<8x128xf32>, vector<128x128xf32>, vector<8x128xf32> -> vector<8x128xf32>
    %60 = arith.addf %59, %54 : vector<8x128xf32>
    %61 = math.tanh %60 : vector<8x128xf32>
    %c3 = arith.constant 3 : index
    %c0_39 = arith.constant 0 : index
    %c0_40 = arith.constant 0 : index
    %62 = vector.load %arg12[%c3, %c0_39, %c0_40] : memref<8x8x128xf32, #tpu.memory_space<vmem>>, vector<1x8x128xf32>
    %63 = vector.shape_cast %62 : vector<1x8x128xf32> to vector<8x128xf32>
    %64 = vector.shape_cast %61 : vector<8x128xf32> to vector<1x8x128xf32>
    tpu.vector_store %arg12[%c3, %c0_39, %c0_40], %64 {strides = array<i32>} : memref<8x8x128xf32, #tpu.memory_space<vmem>>, vector<1x8x128xf32>,
    %cst_41 = arith.constant dense<0.000000e+00> : vector<8x128xf32>
    %65 = tpu.matmul %61, %9, %cst_41 {dimension_numbers = #tpu.dot_dimension_numbers<[1], [0], [0], [1], [0, 0, 1, 1], [], []>} : vector<8x128xf32>, vector<128x128xf32>, vector<8x128xf32> -> vector<8x128xf32>
    %66 = arith.addf %65, %12 : vector<8x128xf32>
    %67 = vector.extract_strided_slice %6 {offsets = [32, 0], sizes = [8, 128], strides = [1, 1]} : vector<64x128xf32> to vector<8x128xf32>
    %cst_42 = arith.constant dense<0.000000e+00> : vector<8x128xf32>
    %68 = tpu.matmul %58, %7, %cst_42 {dimension_numbers = #tpu.dot_dimension_numbers<[1], [0], [0], [1], [0, 0, 1, 1], [], []>} : vector<8x128xf32>, vector<128x128xf32>, vector<8x128xf32> -> vector<8x128xf32>
    %69 = arith.addf %67, %68 : vector<8x128xf32>
    %70 = math.tanh %69 : vector<8x128xf32>
    %cst_43 = arith.constant dense<0.000000e+00> : vector<8x128xf32>
    %71 = tpu.matmul %70, %8, %cst_43 {dimension_numbers = #tpu.dot_dimension_numbers<[1], [0], [0], [1], [0, 0, 1, 1], [], []>} : vector<8x128xf32>, vector<128x128xf32>, vector<8x128xf32> -> vector<8x128xf32>
    %72 = arith.addf %71, %66 : vector<8x128xf32>
    %73 = math.tanh %72 : vector<8x128xf32>
    %c4 = arith.constant 4 : index
    %c0_44 = arith.constant 0 : index
    %c0_45 = arith.constant 0 : index
    %74 = vector.load %arg12[%c4, %c0_44, %c0_45] : memref<8x8x128xf32, #tpu.memory_space<vmem>>, vector<1x8x128xf32>
    %75 = vector.shape_cast %74 : vector<1x8x128xf32> to vector<8x128xf32>
    %76 = vector.shape_cast %73 : vector<8x128xf32> to vector<1x8x128xf32>
    tpu.vector_store %arg12[%c4, %c0_44, %c0_45], %76 {strides = array<i32>} : memref<8x8x128xf32, #tpu.memory_space<vmem>>, vector<1x8x128xf32>,
    %cst_46 = arith.constant dense<0.000000e+00> : vector<8x128xf32>
    %77 = tpu.matmul %73, %9, %cst_46 {dimension_numbers = #tpu.dot_dimension_numbers<[1], [0], [0], [1], [0, 0, 1, 1], [], []>} : vector<8x128xf32>, vector<128x128xf32>, vector<8x128xf32> -> vector<8x128xf32>
    %78 = arith.addf %77, %12 : vector<8x128xf32>
    %79 = vector.extract_strided_slice %6 {offsets = [40, 0], sizes = [8, 128], strides = [1, 1]} : vector<64x128xf32> to vector<8x128xf32>
    %cst_47 = arith.constant dense<0.000000e+00> : vector<8x128xf32>
    %80 = tpu.matmul %70, %7, %cst_47 {dimension_numbers = #tpu.dot_dimension_numbers<[1], [0], [0], [1], [0, 0, 1, 1], [], []>} : vector<8x128xf32>, vector<128x128xf32>, vector<8x128xf32> -> vector<8x128xf32>
    %81 = arith.addf %79, %80 : vector<8x128xf32>
    %82 = math.tanh %81 : vector<8x128xf32>
    %cst_48 = arith.constant dense<0.000000e+00> : vector<8x128xf32>
    %83 = tpu.matmul %82, %8, %cst_48 {dimension_numbers = #tpu.dot_dimension_numbers<[1], [0], [0], [1], [0, 0, 1, 1], [], []>} : vector<8x128xf32>, vector<128x128xf32>, vector<8x128xf32> -> vector<8x128xf32>
    %84 = arith.addf %83, %78 : vector<8x128xf32>
    %85 = math.tanh %84 : vector<8x128xf32>
    %c5 = arith.constant 5 : index
    %c0_49 = arith.constant 0 : index
    %c0_50 = arith.constant 0 : index
    %86 = vector.load %arg12[%c5, %c0_49, %c0_50] : memref<8x8x128xf32, #tpu.memory_space<vmem>>, vector<1x8x128xf32>
    %87 = vector.shape_cast %86 : vector<1x8x128xf32> to vector<8x128xf32>
    %88 = vector.shape_cast %85 : vector<8x128xf32> to vector<1x8x128xf32>
    tpu.vector_store %arg12[%c5, %c0_49, %c0_50], %88 {strides = array<i32>} : memref<8x8x128xf32, #tpu.memory_space<vmem>>, vector<1x8x128xf32>,
    %cst_51 = arith.constant dense<0.000000e+00> : vector<8x128xf32>
    %89 = tpu.matmul %85, %9, %cst_51 {dimension_numbers = #tpu.dot_dimension_numbers<[1], [0], [0], [1], [0, 0, 1, 1], [], []>} : vector<8x128xf32>, vector<128x128xf32>, vector<8x128xf32> -> vector<8x128xf32>
    %90 = arith.addf %89, %12 : vector<8x128xf32>
    %91 = vector.extract_strided_slice %6 {offsets = [48, 0], sizes = [8, 128], strides = [1, 1]} : vector<64x128xf32> to vector<8x128xf32>
    %cst_52 = arith.constant dense<0.000000e+00> : vector<8x128xf32>
    %92 = tpu.matmul %82, %7, %cst_52 {dimension_numbers = #tpu.dot_dimension_numbers<[1], [0], [0], [1], [0, 0, 1, 1], [], []>} : vector<8x128xf32>, vector<128x128xf32>, vector<8x128xf32> -> vector<8x128xf32>
    %93 = arith.addf %91, %92 : vector<8x128xf32>
    %94 = math.tanh %93 : vector<8x128xf32>
    %cst_53 = arith.constant dense<0.000000e+00> : vector<8x128xf32>
    %95 = tpu.matmul %94, %8, %cst_53 {dimension_numbers = #tpu.dot_dimension_numbers<[1], [0], [0], [1], [0, 0, 1, 1], [], []>} : vector<8x128xf32>, vector<128x128xf32>, vector<8x128xf32> -> vector<8x128xf32>
    %96 = arith.addf %95, %90 : vector<8x128xf32>
    %97 = math.tanh %96 : vector<8x128xf32>
    %c6 = arith.constant 6 : index
    %c0_54 = arith.constant 0 : index
    %c0_55 = arith.constant 0 : index
    %98 = vector.load %arg12[%c6, %c0_54, %c0_55] : memref<8x8x128xf32, #tpu.memory_space<vmem>>, vector<1x8x128xf32>
    %99 = vector.shape_cast %98 : vector<1x8x128xf32> to vector<8x128xf32>
    %100 = vector.shape_cast %97 : vector<8x128xf32> to vector<1x8x128xf32>
    tpu.vector_store %arg12[%c6, %c0_54, %c0_55], %100 {strides = array<i32>} : memref<8x8x128xf32, #tpu.memory_space<vmem>>, vector<1x8x128xf32>,
    %cst_56 = arith.constant dense<0.000000e+00> : vector<8x128xf32>
    %101 = tpu.matmul %97, %9, %cst_56 {dimension_numbers = #tpu.dot_dimension_numbers<[1], [0], [0], [1], [0, 0, 1, 1], [], []>} : vector<8x128xf32>, vector<128x128xf32>, vector<8x128xf32> -> vector<8x128xf32>
    %102 = arith.addf %101, %12 : vector<8x128xf32>
    %103 = vector.extract_strided_slice %6 {offsets = [56, 0], sizes = [8, 128], strides = [1, 1]} : vector<64x128xf32> to vector<8x128xf32>
    %cst_57 = arith.constant dense<0.000000e+00> : vector<8x128xf32>
    %104 = tpu.matmul %94, %7, %cst_57 {dimension_numbers = #tpu.dot_dimension_numbers<[1], [0], [0], [1], [0, 0, 1, 1], [], []>} : vector<8x128xf32>, vector<128x128xf32>, vector<8x128xf32> -> vector<8x128xf32>
    %105 = arith.addf %103, %104 : vector<8x128xf32>
    %106 = math.tanh %105 : vector<8x128xf32>
    %cst_58 = arith.constant dense<0.000000e+00> : vector<8x128xf32>
    %107 = tpu.matmul %106, %8, %cst_58 {dimension_numbers = #tpu.dot_dimension_numbers<[1], [0], [0], [1], [0, 0, 1, 1], [], []>} : vector<8x128xf32>, vector<128x128xf32>, vector<8x128xf32> -> vector<8x128xf32>
    %108 = arith.addf %107, %102 : vector<8x128xf32>
    %109 = math.tanh %108 : vector<8x128xf32>
    %c7 = arith.constant 7 : index
    %c0_59 = arith.constant 0 : index
    %c0_60 = arith.constant 0 : index
    %110 = vector.load %arg12[%c7, %c0_59, %c0_60] : memref<8x8x128xf32, #tpu.memory_space<vmem>>, vector<1x8x128xf32>
    %111 = vector.shape_cast %110 : vector<1x8x128xf32> to vector<8x128xf32>
    %112 = vector.shape_cast %109 : vector<8x128xf32> to vector<1x8x128xf32>
    tpu.vector_store %arg12[%c7, %c0_59, %c0_60], %112 {strides = array<i32>} : memref<8x8x128xf32, #tpu.memory_space<vmem>>, vector<1x8x128xf32>,
    %c0_61 = arith.constant 0 : index
    %c0_62 = arith.constant 0 : index
    %c0_63 = arith.constant 0 : index
    %113 = vector.load %arg11[%c0_61, %c0_62, %c0_63] : memref<2x8x128xf32, #tpu.memory_space<vmem>>, vector<1x8x128xf32>
    %114 = vector.shape_cast %113 : vector<1x8x128xf32> to vector<8x128xf32>
    %115 = vector.shape_cast %106 : vector<8x128xf32> to vector<1x8x128xf32>
    tpu.vector_store %arg11[%c0_61, %c0_62, %c0_63], %115 {strides = array<i32>} : memref<2x8x128xf32, #tpu.memory_space<vmem>>, vector<1x8x128xf32>,
    %c1_64 = arith.constant 1 : index
    %c0_65 = arith.constant 0 : index
    %c0_66 = arith.constant 0 : index
    %116 = vector.load %arg11[%c1_64, %c0_65, %c0_66] : memref<2x8x128xf32, #tpu.memory_space<vmem>>, vector<1x8x128xf32>
    %117 = vector.shape_cast %116 : vector<1x8x128xf32> to vector<8x128xf32>
    %118 = vector.shape_cast %109 : vector<8x128xf32> to vector<1x8x128xf32>
    tpu.vector_store %arg11[%c1_64, %c0_65, %c0_66], %118 {strides = array<i32>} : memref<2x8x128xf32, #tpu.memory_space<vmem>>, vector<1x8x128xf32>,
    %c0_67 = arith.constant 0 : index
    %c0_68 = arith.constant 0 : index
    %c0_69 = arith.constant 0 : index
    %119 = vector.load %arg12[%c0_67, %c0_68, %c0_69] : memref<8x8x128xf32, #tpu.memory_space<vmem>>, vector<8x8x128xf32>
    %120 = vector.shape_cast %119 : vector<8x8x128xf32> to vector<64x128xf32>
    %c0_70 = arith.constant 0 : index
    %c0_71 = arith.constant 0 : index
    %121 = vector.load %arg8[%c0_70, %c0_71] : memref<128x128xf32, #tpu.memory_space<vmem>>, vector<128x128xf32>
    %cst_72 = arith.constant dense<0.000000e+00> : vector<64x128xf32>
    %122 = tpu.matmul %120, %121, %cst_72 {dimension_numbers = #tpu.dot_dimension_numbers<[1], [0], [0], [1], [0, 0, 1, 1], [], []>} : vector<64x128xf32>, vector<128x128xf32>, vector<64x128xf32> -> vector<64x128xf32>
    %c0_73 = arith.constant 0 : index
    %c0_74 = arith.constant 0 : index
    %123 = vector.load %arg9[%c0_73, %c0_74] : memref<1x128xf32, #tpu.memory_space<vmem>>, vector<1x128xf32>
    %124 = vector.broadcast %123 : vector<1x128xf32> to vector<64x128xf32>
    %125 = arith.addf %122, %124 : vector<64x128xf32>
    %126 = vector.shape_cast %125 : vector<64x128xf32> to vector<8x8x128xf32>
    %c0_75 = arith.constant 0 : index
    %c0_76 = arith.constant 0 : index
    %c0_77 = arith.constant 0 : index
    %127 = vector.load %arg10[%c0_75, %c0_76, %c0_77] : memref<8x8x128xf32, #tpu.memory_space<vmem>>, vector<8x8x128xf32>
    tpu.vector_store %arg10[%c0_75, %c0_76, %c0_77], %126 {strides = array<i32>} : memref<8x8x128xf32, #tpu.memory_space<vmem>>, vector<8x8x128xf32>,
    return
  }
}

</mosaic_0001>

<bundles_post_ra>
// kernel: rnn_model_forward.1
= control target key start
LH: loop header
LB: loop body
LE: loop exit
PB: predicated region body
PF: predicated region fallthrough
CT: control target
= control target key end

     0   :  { %17 = vsyncpa [#allocation4], 0  ;;  %s5146_s0 = inlined_call_operand.vmem [shape: f32[8,8,128], index: 0, kind: input, shape index: {}]   ;;  %s5147_s1 = inlined_call_operand.vmem [shape: f32[2,8,128], index: 1, kind: input, shape index: {}]   ;;  %s5148_s2 = inlined_call_operand.vmem [shape: f32[128,128], index: 2, kind: input, shape index: {}]   ;;  %s5149_s3 = inlined_call_operand.hbm [shape: f32[128,128], index: 3, kind: input, shape index: {}]   ;;  %s5150_s4 = inlined_call_operand.vmem [shape: f32[1,128], index: 4, kind: input, shape index: {}]   ;;  %s5151_s5 = inlined_call_operand.hbm [shape: f32[128,128], index: 5, kind: input, shape index: {}]   ;;  %s5152_s6 = inlined_call_operand.hbm [shape: f32[128,128], index: 6, kind: input, shape index: {}]   ;;  %s5153_s7 = inlined_call_operand.vmem [shape: f32[1,128], index: 7, kind: input, shape index: {}]   ;;  %s5154_s8 = inlined_call_operand.hbm [shape: f32[128,128], index: 8, kind: input, shape index: {}]   ;;  %s5155_s9 = inlined_call_operand.vmem [shape: f32[1,128], index: 9, kind: input, shape index: {}]   ;;  %s5156_s10 = inlined_call_operand.vmem [shape: f32[8,8,128], index: 10, kind: output, shape index: {0}]   ;;  %s5157_s11 = inlined_call_operand.vmem [shape: f32[2,8,128], index: 11, kind: output, shape index: {1}]  }
   0x1   :  { %18 = vsyncpa [#allocation6], 0 }
   0x2   :  { %19 = vsyncpa [#allocation9], 0  ;;  %s4351_s17 = smov [#allocation5]   ;;  %s4352_s19 = smov [#allocation3]  }
   0x3   :  { %s45_s18 = sshll.u32 %s4351_s17, 4  ;;  %s31_s20 = sshll.u32 %s4352_s19, 4  ;;  %s46_s18 = int_to_ptr.vmem [resolvable:$true] %s45_s18  ;;  %s4420_s20 = int_to_ptr.vmem [resolvable:$true] %s31_s20 }
   0x4   :  { %s4257_s23 = scalar_lea.hbm %s5151_s5, 2048 }
   0x5   :  { %p4258_p0 = scmp.ne.s32.totalorder %s5151_s5, %s4257_s23  ;;  %p4261_p1 = scmp.lt.u32.totalorder %s4257_s23, %s5151_s5 }
   0x7   :  { %p4263_p2 = pnand %p4261_p1, %p4258_p0 }
   0x9   :  { %4266 = shalt.err (!%p4263_p2)
}
   0xa   :  { %s4267_s28 = scalar_lea.vmem %s46_s18, 2048  ;;  %p4272_p4 = scmp.lt.s32.totalorder %s46_s18, %s46_s18 }
   0xb   :  { %p4268_p3 = scmp.ne.s32.totalorder %s46_s18, %s4267_s28  ;;  %p4273_p5 = scmp.lt.s32.totalorder %s4267_s28, %s4267_s28 }
   0xd   :  { %p4274_p6 = por %p4273_p5, %p4272_p4 }
   0xf   :  { %p4275_p7 = pnand %p4274_p6, %p4268_p3 }
  0x11   :  { %4278 = shalt.err (!%p4275_p7)
}
  0x12   :  { %s4353_s29 = smov 128   ;;  %s4354_s30 = smov 8  }
  0x13   :  { %51 = dma.hbm_to_vmem [thread:$0]  %s5151_s5, 2048, %s46_s18, [#allocation6], %s4353_s29, %s4353_s29, %s4354_s30  }
  0x14   :  { %s4279_s16 = scalar_lea.hbm %s5149_s3, 2048 }
  0x15   :  { %p4280_p8 = scmp.ne.s32.totalorder %s5149_s3, %s4279_s16  ;;  %p4283_p9 = scmp.lt.u32.totalorder %s4279_s16, %s5149_s3 }
  0x17   :  { %p4285_p10 = pnand %p4283_p9, %p4280_p8 }
  0x19   :  { %4288 = shalt.err (!%p4285_p10)
}
  0x1a   :  { %s4289_s23 = scalar_lea.vmem %s4420_s20, 2048  ;;  %p4294_p12 = scmp.lt.s32.totalorder %s4420_s20, %s4420_s20 }
  0x1b   :  { %p4290_p11 = scmp.ne.s32.totalorder %s4420_s20, %s4289_s23  ;;  %p4295_p13 = scmp.lt.s32.totalorder %s4289_s23, %s4289_s23 }
  0x1d   :  { %p4296_p0 = por %p4295_p13, %p4294_p12 }
  0x1f   :  { %p4297_p1 = pnand %p4296_p0, %p4290_p11 }
  0x21   :  { %4300 = shalt.err (!%p4297_p1)
}
  0x22   :  { %37 = dma.hbm_to_vmem [thread:$0]  %s5149_s3, 2048, %s4420_s20, [#allocation4], %s4353_s29, %s4353_s29, %s4354_s30  }
  0x23   :  { %s4355_s24 = smov [#allocation7]   ;;  %s4356_s26 = smov [#allocation8]  }
  0x24   :  { %s57_s25 = sshll.u32 %s4355_s24, 4  ;;  %s71_s27 = sshll.u32 %s4356_s26, 4  ;;  %s58_s25 = int_to_ptr.vmem [resolvable:$true] %s57_s25  ;;  %s4457_s27 = int_to_ptr.vmem [resolvable:$true] %s71_s27 }
  0x25   :  { %s4301_s13 = scalar_lea.hbm %s5152_s6, 2048 }
  0x26   :  { %p4302_p2 = scmp.ne.s32.totalorder %s5152_s6, %s4301_s13  ;;  %p4305_p3 = scmp.lt.u32.totalorder %s4301_s13, %s5152_s6 }
  0x28   :  { %p4307_p4 = pnand %p4305_p3, %p4302_p2 }
  0x2a   :  { %4310 = shalt.err (!%p4307_p4)
}
  0x2b   :  { %s4311_s3 = scalar_lea.vmem %s58_s25, 2048  ;;  %p4316_p6 = scmp.lt.s32.totalorder %s58_s25, %s58_s25 }
  0x2c   :  { %p4312_p5 = scmp.ne.s32.totalorder %s58_s25, %s4311_s3  ;;  %p4317_p7 = scmp.lt.s32.totalorder %s4311_s3, %s4311_s3 }
  0x2e   :  { %p4318_p8 = por %p4317_p7, %p4316_p6 }
  0x30   :  { %p4319_p9 = pnand %p4318_p8, %p4312_p5 }
  0x32   :  { %4322 = shalt.err (!%p4319_p9)
}
  0x33   :  { %63 = dma.hbm_to_vmem [thread:$0]  %s5152_s6, 2048, %s58_s25, [#allocation6], %s4353_s29, %s4353_s29, %s4354_s30  }
  0x34   :  { %s4323_s23 = scalar_lea.hbm %s5154_s8, 2048 }
  0x35   :  { %p4324_p10 = scmp.ne.s32.totalorder %s5154_s8, %s4323_s23  ;;  %p4327_p11 = scmp.lt.u32.totalorder %s4323_s23, %s5154_s8 }
  0x37   :  { %p4329_p12 = pnand %p4327_p11, %p4324_p10 }
  0x39   :  { %4332 = shalt.err (!%p4329_p12)
}
  0x3a   :  { %s4333_s28 = scalar_lea.vmem %s4457_s27, 2048  ;;  %p4338_p0 = scmp.lt.s32.totalorder %s4457_s27, %s4457_s27 }
  0x3b   :  { %p4334_p13 = scmp.ne.s32.totalorder %s4457_s27, %s4333_s28  ;;  %p4339_p1 = scmp.lt.s32.totalorder %s4333_s28, %s4333_s28 }
  0x3d   :  { %p4340_p2 = por %p4339_p1, %p4338_p0 }
  0x3f   :  { %p4341_p3 = pnand %p4340_p2, %p4334_p13 }
  0x41   :  { %4344 = shalt.err (!%p4341_p3)
}
  0x42   :  { %77 = dma.hbm_to_vmem [thread:$0]  %s5154_s8, 2048, %s4457_s27, [#allocation9], %s4353_s29, %s4353_s29, %s4354_s30  }
  0x43   :  { %4345 = dma.done.wait [#allocation4], 2048  }
  0x44   :  { %4346 = vsyncadd [#allocation4], 4294965248 }
  0x45   :  { %4347 = dma.done.wait [#allocation6], 4096  }
  0x46   :  { %4348 = vsyncadd [#allocation6], 4294963200 }
  0x47   :  { %4349 = dma.done.wait [#allocation9], 2048  }
  0x48   :  { %4350 = vsyncadd [#allocation9], 4294965248  ;;  %v4357_v0 = vmov 0.0|0.0   ;;  %vm4358_vm0 = vmmov 0   ;;  %v4359_v1 = vmov 0.0   ;;  %v100_v2 = vld [vmem:[%s5148_s2] sm:$0xff] }
  0x49   :  { %3584 = vmatprep.subr.bf16.mxu1 %v4357_v0  ;;  %2700 = vmatprep.mubr.msk.f32.mxu1 %vm4358_vm0, %v4359_v1  ;;  %v101_v3 = vld [vmem:[%s5148_s2 + $0x8] sm:$0xff]  ;;  %v102_v4 = vld [vmem:[%s5148_s2 + $0x10] sm:$0xff]  ;;  %v103_v6 = vld [vmem:[%s5148_s2 + $0x18] sm:$0xff] }
  0x4a   :  { %v3552_v5 = vpack.c.bf16 %v101_v3, %v100_v2  ;;  %v3556_v7 = vpack.c.bf16 %v103_v6, %v102_v4  ;;  %v104_v8 = vld [vmem:[%s5148_s2 + $0x20] sm:$0xff]  ;;  %v105_v9 = vld [vmem:[%s5148_s2 + $0x28] sm:$0xff]  ;;  %v106_v12 = vld [vmem:[%s5148_s2 + $0x30] sm:$0xff] }
  0x4b   :  { %v3560_v10 = vpack.c.bf16 %v105_v9, %v104_v8  ;;  %v92_v11 = vld [vmem:[%s5146_s0] sm:$0xff]  ;;  %v107_v13 = vld [vmem:[%s5148_s2 + $0x38] sm:$0xff]  ;;  %v109_v16 = vld [vmem:[%s5148_s2 + $0x48] sm:$0xff] }
  0x4c   :  { %3553 = vmatprep.subr.bf16.mxu0 %v3552_v5  ;;  %2656 = vmatprep.mubr.f32.mxu0 %v92_v11  ;;  %v3564_v14 = vpack.c.bf16 %v107_v13, %v106_v12  ;;  %v108_v15 = vld [vmem:[%s5148_s2 + $0x40] sm:$0xff]  ;;  %v110_v18 = vld [vmem:[%s5148_s2 + $0x50] sm:$0xff]  ;;  %v111_v19 = vld [vmem:[%s5148_s2 + $0x58] sm:$0xff] }
  0x4d   :  { %3555 = vmatpush3.bf16.msra.mxu0 %v3552_v5  ;;  %v3568_v17 = vpack.c.bf16 %v109_v16, %v108_v15  ;;  %v260_v20 = vld [vmem:[#allocation7] sm:$0xff]  ;;  %v261_v21 = vld [vmem:[#allocation7 + $0x8] sm:$0xff]  ;;  %v262_v22 = vld [vmem:[#allocation7 + $0x10] sm:$0xff]  ;;  %v3572_v25 = vpack.c.bf16 %v111_v19, %v110_v18 }
  0x4e   :  { %3557 = vmatprep.subr.bf16.mxu0 %v3556_v7  ;;  %v263_v23 = vld [vmem:[#allocation7 + $0x18] sm:$0xff]  ;;  %v4536_v24 = vpack.c.bf16 %v261_v21, %v260_v20  ;;  %v112_v26 = vld [vmem:[%s5148_s2 + $0x60] sm:$0xff]  ;;  %v113_v28 = vld [vmem:[%s5148_s2 + $0x68] sm:$0xff] }
  0x4f   :  { %v4542_v27 = vpack.c.bf16 %v263_v23, %v262_v22  ;;  %v264_v29 = vld [vmem:[#allocation7 + $0x20] sm:$0xff]  ;;  %v265_v30 = vld [vmem:[#allocation7 + $0x28] sm:$0xff]  ;;  %v3576_v31 = vpack.c.bf16 %v113_v28, %v112_v26  ;;  %v114_v32 = vld [vmem:[%s5148_s2 + $0x70] sm:$0xff] }
  0x50   :  { %3586 = vmatpush3.bf16.msra.mxu1 %v4536_v24  ;;  %v4552_v33 = vpack.c.bf16 %v265_v30, %v264_v29  ;;  %v115_v34 = vld [vmem:[%s5148_s2 + $0x78] sm:$0xff]  ;;  %v266_v35 = vld [vmem:[#allocation7 + $0x30] sm:$0xff]  ;;  %v268_v39 = vld [vmem:[#allocation7 + $0x40] sm:$0xff] }
  0x51   :  { %3559 = vmatpush3.bf16.msra.mxu0 %v3556_v7  ;;  %3587 = vmatprep.subr.bf16.mxu1 %v4357_v0  ;;  %v267_v36 = vld [vmem:[#allocation7 + $0x38] sm:$0xff]  ;;  %v3580_v37 = vpack.c.bf16 %v115_v34, %v114_v32  ;;  %v269_v40 = vld [vmem:[#allocation7 + $0x48] sm:$0xff]  ;;  %v228_v41 = vld [vmem:[#allocation3] sm:$0xff] }
  0x52   :  { %3561 = vmatprep.subr.bf16.mxu0 %v3560_v10  ;;  %v4559_v38 = vpack.c.bf16 %v267_v36, %v266_v35  ;;  %v229_v42 = vld [vmem:[#allocation3 + $0x8] sm:$0xff]  ;;  %v4563_v43 = vpack.c.bf16 %v269_v40, %v268_v39  ;;  %v230_v46 = vld [vmem:[#allocation3 + $0x10] sm:$0xff]  ;;  %v231_v47 = vld [vmem:[#allocation3 + $0x18] sm:$0xff] }
  0x53   :  { %v93_v44 = vld [vmem:[%s5146_s0 + $0x8] sm:$0xff]  ;;  %v4569_v45 = vpack.c.bf16 %v229_v42, %v228_v41  ;;  %v94_v48 = vld [vmem:[%s5146_s0 + $0x10] sm:$0xff]  ;;  %v4578_v49 = vpack.c.bf16 %v231_v47, %v230_v46  ;;  %v95_v50 = vld [vmem:[%s5146_s0 + $0x18] sm:$0xff] }
  0x54   :  { %3589 = vmatpush3.bf16.msra.mxu1 %v4542_v27  ;;  %v232_v51 = vld [vmem:[#allocation3 + $0x20] sm:$0xff]  ;;  %v233_v52 = vld [vmem:[#allocation3 + $0x28] sm:$0xff]  ;;  %v234_v56 = vld [vmem:[#allocation3 + $0x30] sm:$0xff] }
  0x55   :  { %3563 = vmatpush3.bf16.msra.mxu0 %v3560_v10  ;;  %3590 = vmatprep.subr.bf16.mxu1 %v4357_v0  ;;  %v96_v53 = vld [vmem:[%s5146_s0 + $0x20] sm:$0xff]  ;;  %v4588_v54 = vpack.c.bf16 %v233_v52, %v232_v51  ;;  %v97_v55 = vld [vmem:[%s5146_s0 + $0x28] sm:$0xff]  ;;  %v235_v57 = vld [vmem:[#allocation3 + $0x38] sm:$0xff] }
  0x56   :  { %3565 = vmatprep.subr.bf16.mxu0 %v3564_v14  ;;  %v98_v58 = vld [vmem:[%s5146_s0 + $0x30] sm:$0xff]  ;;  %v4598_v59 = vpack.c.bf16 %v235_v57, %v234_v56  ;;  %v99_v60 = vld [vmem:[%s5146_s0 + $0x38] sm:$0xff]  ;;  %v236_v61 = vld [vmem:[#allocation3 + $0x40] sm:$0xff] }
  0x57   :  { %v237_v62 = vld [vmem:[#allocation3 + $0x48] sm:$0xff]  ;;  %v238_v2 = vld [vmem:[#allocation3 + $0x50] sm:$0xff]  ;;  %v239_v3 = vld [vmem:[#allocation3 + $0x58] sm:$0xff] }
  0x58   :  { %3592 = vmatpush3.bf16.msra.mxu1 %v4552_v33  ;;  %v4605_v63 = vpack.c.bf16 %v237_v62, %v236_v61  ;;  %v4611_v4 = vpack.c.bf16 %v239_v3, %v238_v2  ;;  %v240_v5 = vld [vmem:[#allocation3 + $0x60] sm:$0xff]  ;;  %v241_v6 = vld [vmem:[#allocation3 + $0x68] sm:$0xff]  ;;  %v242_v8 = vld [vmem:[#allocation3 + $0x70] sm:$0xff] }
  0x59   :  { %3567 = vmatpush3.bf16.msra.mxu0 %v3564_v14  ;;  %3593 = vmatprep.subr.bf16.mxu1 %v4357_v0  ;;  %v4615_v7 = vpack.c.bf16 %v241_v6, %v240_v5  ;;  %v243_v9 = vld [vmem:[#allocation3 + $0x78] sm:$0xff]  ;;  %v283_v11 = vld [vmem:[%s5147_s1] sm:$0xff]  ;;  %v270_v12 = vld [vmem:[#allocation7 + $0x50] sm:$0xff] }
  0x5a   :  { %3569 = vmatprep.subr.bf16.mxu0 %v3568_v17  ;;  %v4619_v10 = vpack.c.bf16 %v243_v9, %v242_v8  ;;  %v271_v13 = vld [vmem:[#allocation7 + $0x58] sm:$0xff]  ;;  %v272_v15 = vld [vmem:[#allocation7 + $0x60] sm:$0xff]  ;;  %v273_v16 = vld [vmem:[#allocation7 + $0x68] sm:$0xff] }
  0x5b   :  { %v4639_v14 = vpack.c.bf16 %v271_v13, %v270_v12  ;;  %v274_v18 = vld [vmem:[#allocation7 + $0x70] sm:$0xff]  ;;  %v275_v19 = vld [vmem:[#allocation7 + $0x78] sm:$0xff]  ;;  %v244_v21 = vld [vmem:[#allocation5] sm:$0xff] }
  0x5c   :  { %3595 = vmatpush3.bf16.msra.mxu1 %v4559_v38  ;;  %v4648_v20 = vpack.c.bf16 %v275_v19, %v274_v18  ;;  %v245_v22 = vld [vmem:[#allocation5 + $0x8] sm:$0xff]  ;;  %v246_v26 = vld [vmem:[#allocation5 + $0x10] sm:$0xff]  ;;  %v247_v28 = vld [vmem:[#allocation5 + $0x18] sm:$0xff] }
  0x5d   :  { %3571 = vmatpush3.bf16.msra.mxu0 %v3568_v17  ;;  %3596 = vmatprep.subr.bf16.mxu1 %v4357_v0  ;;  %v4644_v17 = vpack.c.bf16 %v273_v16, %v272_v15  ;;  %v2165_v23 = vld [vmem:[%s5147_s1 + $0x8] sm:$0xff]  ;;  %v4663_v29 = vpack.c.bf16 %v247_v28, %v246_v26  ;;  %v248_v30 = vld [vmem:[#allocation5 + $0x20] sm:$0xff]  ;;  %v250_v34 = vld [vmem:[#allocation5 + $0x30] sm:$0xff] }
  0x5e   :  { %3573 = vmatprep.subr.bf16.mxu0 %v3572_v25  ;;  %v251_v35 = vld [vmem:[#allocation5 + $0x38] sm:$0xff]  ;;  %v253_v39 = vld [vmem:[#allocation5 + $0x48] sm:$0xff]  ;;  %v254_v41 = vld [vmem:[#allocation5 + $0x50] sm:$0xff] }
  0x5f   :  { %v4673_v36 = vpack.c.bf16 %v251_v35, %v250_v34  ;;  %v255_v42 = vld [vmem:[#allocation5 + $0x58] sm:$0xff]  ;;  %v256_v46 = vld [vmem:[#allocation5 + $0x60] sm:$0xff]  ;;  %v257_v47 = vld [vmem:[#allocation5 + $0x68] sm:$0xff] }
  0x60   :  { %3598 = vmatpush3.bf16.msra.mxu1 %v4563_v43  ;;  %v259_v51 = vld [vmem:[#allocation5 + $0x78] sm:$0xff] }
  0x61   :  { %3575 = vmatpush3.bf16.msra.mxu0 %v3572_v25  ;;  %3599 = vmatprep.subr.bf16.mxu1 %v4357_v0  ;;  %v4657_v25 = vpack.c.bf16 %v245_v22, %v244_v21  ;;  %v4750_v21 = vld [vmem:[%s5153_s7] ss:$0 sm:$0xff] }
  0x62   :  { %3577 = vmatprep.subr.bf16.mxu0 %v3576_v31 }
  0x64   :  { %3601 = vmatpush3.bf16.msra.mxu1 %v4639_v14 }
  0x65   :  { %3579 = vmatpush3.bf16.msra.mxu0 %v3576_v31  ;;  %3602 = vmatprep.subr.bf16.mxu1 %v4357_v0  ;;  %v249_v31 = vld [vmem:[#allocation5 + $0x28] sm:$0xff] }
  0x66   :  { %3581 = vmatprep.subr.bf16.mxu0 %v3580_v37  ;;  %v4669_v32 = vpack.c.bf16 %v249_v31, %v248_v30 }
  0x68   :  { %3604 = vmatpush3.bf16.msra.mxu1 %v4644_v17 }
  0x69   :  { %3583 = vmatpush3.bf16.msra.mxu0 %v3580_v37  ;;  %3605 = vmatprep.subr.bf16.mxu1 %v4357_v0  ;;  %v252_v37 = vld [vmem:[#allocation5 + $0x40] sm:$0xff] }
  0x6a   :  { %3608 = vmatprep.subr.bf16.mxu0 %v4357_v0  ;;  %v4677_v40 = vpack.c.bf16 %v253_v39, %v252_v37 }
  0x6c   :  { %2657 = vmatmul.mubr.f32.vlgmr.msra.gmra.mrb[0].mxu0 %v93_v44  ;;  %3607 = vmatpush3.bf16.msra.mxu1 %v4648_v20  ;;  %v4682_v44 = vpack.c.bf16 %v255_v42, %v254_v41 }
  0x6d   :  { %3610 = vmatpush3.bf16.msra.mxu0 %v4569_v45  ;;  %2659 = vmatprep.mubr.f32.mxu0 %v94_v48  ;;  %v258_v48 = vld [vmem:[#allocation5 + $0x70] sm:$0xff] }
  0x6e   :  { %3611 = vmatprep.subr.bf16.mxu0 %v4357_v0  ;;  %3632 = vmatprep.subr.bf16.mxu1 %v4357_v0  ;;  %v4689_v52 = vpack.c.bf16 %v259_v51, %v258_v48 }
  0x6f   :  { %2701 = vmatmul.mubr.f32.vlgmr.msra.gmra.mrb[0].mxu1 %v2165_v23 }
  0x70   :  { %2660 = vmatmul.mubr.f32.gmra.mrb[2].mxu0 %v95_v50  ;;  %3634 = vmatpush3.bf16.msra.mxu1 %v4657_v25  ;;  %v4686_v50 = vpack.c.bf16 %v257_v47, %v256_v46 }
  0x71   :  { %3613 = vmatpush3.bf16.msra.mxu0 %v4578_v49  ;;  %2662 = vmatprep.mubr.f32.mxu0 %v96_v53  ;;  %v2163_v53 = vld [vmem:[%s5150_s4] ss:$0 sm:$0xff] }
  0x72   :  { %3614 = vmatprep.subr.bf16.mxu0 %v4357_v0  ;;  %2770 = vmatprep.mubr.msk.f32.mxu1 %vm4358_vm0, %v4359_v1 }
  0x73   :  { %3635 = vmatprep.subr.bf16.mxu1 %v4357_v0 }
  0x74   :  { %2663 = vmatmul.mubr.f32.gmra.mrb[4].mxu0 %v97_v55  ;;  %3637 = vmatpush3.bf16.msra.mxu1 %v4663_v29 }
  0x75   :  { %3616 = vmatpush3.bf16.msra.mxu0 %v4588_v54  ;;  %2665 = vmatprep.mubr.f32.mxu0 %v98_v58 }
  0x76   :  { %3617 = vmatprep.subr.bf16.mxu0 %v4357_v0  ;;  %3638 = vmatprep.subr.bf16.mxu1 %v4357_v0 }
  0x78   :  { %2666 = vmatmul.mubr.f32.gmra.mrb[6].mxu0 %v99_v60  ;;  %3640 = vmatpush3.bf16.msra.mxu1 %v4669_v32 }
  0x79   :  { %3619 = vmatpush3.bf16.msra.mxu0 %v4598_v59  ;;  %2735 = vmatprep.mubr.msk.f32.mxu0 %vm4358_vm0, %v4359_v1 }
  0x7a   :  { %3620 = vmatprep.subr.bf16.mxu0 %v4357_v0  ;;  %3641 = vmatprep.subr.bf16.mxu1 %v4357_v0 }
  0x7c   :  { %3643 = vmatpush3.bf16.msra.mxu1 %v4673_v36 }
  0x7d   :  { %3622 = vmatpush3.bf16.msra.mxu0 %v4605_v63  ;;  %3644 = vmatprep.subr.bf16.mxu1 %v4357_v0 }
  0x7e   :  { %3623 = vmatprep.subr.bf16.mxu0 %v4357_v0 }
  0x80   :  { %3646 = vmatpush3.bf16.msra.mxu1 %v4677_v40 }
  0x81   :  { %3625 = vmatpush3.bf16.msra.mxu0 %v4611_v4  ;;  %3647 = vmatprep.subr.bf16.mxu1 %v4357_v0 }
  0x82   :  { %3626 = vmatprep.subr.bf16.mxu0 %v4357_v0 }
  0x84   :  { %3649 = vmatpush3.bf16.msra.mxu1 %v4682_v44 }
  0x85   :  { %3628 = vmatpush3.bf16.msra.mxu0 %v4615_v7  ;;  %3650 = vmatprep.subr.bf16.mxu1 %v4357_v0 }
  0x86   :  { %3629 = vmatprep.subr.bf16.mxu0 %v4357_v0 }
  0x88   :  { %3652 = vmatpush3.bf16.msra.mxu1 %v4686_v50 }
  0x89   :  { %3631 = vmatpush3.bf16.msra.mxu0 %v4619_v10  ;;  %3653 = vmatprep.subr.bf16.mxu1 %v4357_v0 }
  0x8a   :  { %3656 = vmatprep.subr.bf16.mxu0 %v4357_v0 }
  0x8c   :  { %2736 = vmatmul.mubr.f32.vlgmr.msra.gmra.mrb[8].mxu0 %v283_v11  ;;  %3655 = vmatpush3.bf16.msra.mxu1 %v4689_v52 }
  0x8d   :  { %3658 = vmatpush3.bf16.msra.mxu0 %v4536_v24  ;;  %2805 = vmatprep.mubr.msk.f32.mxu0 %vm4358_vm0, %v4359_v1 }
  0x8e   :  { %3659 = vmatprep.subr.bf16.mxu0 %v4357_v0  ;;  %3680 = vmatprep.subr.bf16.mxu1 %v4357_v0 }
  0x91   :  { %3661 = vmatpush3.bf16.msra.mxu0 %v4542_v27 }
  0x92   :  { %3662 = vmatprep.subr.bf16.mxu0 %v4357_v0 }
  0x95   :  { %3664 = vmatpush3.bf16.msra.mxu0 %v4552_v33 }
  0x96   :  { %3665 = vmatprep.subr.bf16.mxu0 %v4357_v0 }
  0x99   :  { %3667 = vmatpush3.bf16.msra.mxu0 %v4559_v38 }
  0x9a   :  { %3668 = vmatprep.subr.bf16.mxu0 %v4357_v0 }
  0x9d   :  { %3670 = vmatpush3.bf16.msra.mxu0 %v4563_v43 }
  0x9e   :  { %3671 = vmatprep.subr.bf16.mxu0 %v4357_v0 }
  0xa1   :  { %3673 = vmatpush3.bf16.msra.mxu0 %v4639_v14 }
  0xa2   :  { %3674 = vmatprep.subr.bf16.mxu0 %v4357_v0 }
  0xa5   :  { %3676 = vmatpush3.bf16.msra.mxu0 %v4644_v17 }
  0xa6   :  { %3677 = vmatprep.subr.bf16.mxu0 %v4357_v0 }
  0xa9   :  { %3679 = vmatpush3.bf16.msra.mxu0 %v4648_v20 }
  0xaa   :  { %3704 = vmatprep.subr.bf16.mxu0 %v4357_v0 }
 0x13f   :  { %v2658_v55 = vpop.f32.mrb[0].mxu0 }
 0x140   :  { %v4697_v56 = vadd.f32 %v2658_v55, %v2163_v53  ;;  %v189_v57 = vpop.f32.mrb[1].mxu0 }
 0x141   :  { %v190_v13 = vadd.f32 %v2163_v53, %v189_v57 }
 0x143   :  { %v2661_v58 = vpop.f32.mrb[2].mxu0 }
 0x144   :  { %v4699_v60 = vadd.f32 %v2661_v58, %v2163_v53  ;;  %v199_v61 = vpop.f32.mrb[3].mxu0 }
 0x145   :  { %v4701_v62 = vadd.f32 %v2163_v53, %v199_v61 }
 0x147   :  { %v2664_v2 = vpop.f32.mrb[4].mxu0 }
 0x148   :  { %v4703_v3 = vadd.f32 %v2664_v2, %v2163_v53  ;;  %v209_v5 = vpop.f32.mrb[5].mxu0 }
 0x149   :  { %v4705_v6 = vadd.f32 %v2163_v53, %v209_v5 }
 0x14b   :  { %v2667_v8 = vpop.f32.mrb[6].mxu0 }
 0x14c   :  { %v4707_v9 = vadd.f32 %v2667_v8, %v2163_v53  ;;  %v219_v11 = vpop.f32.mrb[7].mxu0 }
 0x14d   :  { %v4709_v12 = vadd.f32 %v2163_v53, %v219_v11 }
 0x15f   :  { %v422_v15 = vpop.f32.mrb[8].mxu0 }
 0x160   :  { %v426_v16 = vadd.f32 %v422_v15, %v190_v13  ;;  %v2737_v18 = vpop.f32.mrb[9].mxu0 }
 0x162   :  { %4225 = vtanh.f32 %v426_v16 }
 0x16c   :  { %v4226_v19 = vpop.eup %4225 }
 0x16d   :  { %2771 = vmatmul.mubr.f32.vlgmr.msra.gmra.mrb[0].mxu1 %v4226_v19 }
 0x16e   :  { %3682 = vmatpush3.bf16.msra.mxu1 %v4569_v45  ;;  %2840 = vmatprep.mubr.msk.f32.mxu1 %vm4358_vm0, %v4359_v1 }
 0x16f   :  { %3683 = vmatprep.subr.bf16.mxu1 %v4357_v0 }
 0x172   :  { %3685 = vmatpush3.bf16.msra.mxu1 %v4578_v49 }
 0x173   :  { %3686 = vmatprep.subr.bf16.mxu1 %v4357_v0 }
 0x176   :  { %3688 = vmatpush3.bf16.msra.mxu1 %v4588_v54 }
 0x177   :  { %3689 = vmatprep.subr.bf16.mxu1 %v4357_v0 }
 0x17a   :  { %3691 = vmatpush3.bf16.msra.mxu1 %v4598_v59 }
 0x17b   :  { %3692 = vmatprep.subr.bf16.mxu1 %v4357_v0 }
 0x17e   :  { %3694 = vmatpush3.bf16.msra.mxu1 %v4605_v63 }
 0x17f   :  { %3695 = vmatprep.subr.bf16.mxu1 %v4357_v0 }
 0x182   :  { %3697 = vmatpush3.bf16.msra.mxu1 %v4611_v4 }
 0x183   :  { %3698 = vmatprep.subr.bf16.mxu1 %v4357_v0 }
 0x186   :  { %3700 = vmatpush3.bf16.msra.mxu1 %v4615_v7 }
 0x187   :  { %3701 = vmatprep.subr.bf16.mxu1 %v4357_v0 }
 0x18a   :  { %3703 = vmatpush3.bf16.msra.mxu1 %v4619_v10 }
 0x18b   :  { %3728 = vmatprep.subr.bf16.mxu1 %v4357_v0 }
 0x18d   :  { %2841 = vmatmul.mubr.f32.vlgmr.msra.gmra.mrb[2].mxu1 %v4226_v19 }
 0x18e   :  { %3730 = vmatpush3.bf16.msra.mxu1 %v4536_v24  ;;  %2910 = vmatprep.mubr.msk.f32.mxu1 %vm4358_vm0, %v4359_v1 }
 0x18f   :  { %3731 = vmatprep.subr.bf16.mxu1 %v4357_v0 }
 0x192   :  { %3733 = vmatpush3.bf16.msra.mxu1 %v4542_v27 }
 0x193   :  { %3734 = vmatprep.subr.bf16.mxu1 %v4357_v0 }
 0x196   :  { %3736 = vmatpush3.bf16.msra.mxu1 %v4552_v33 }
 0x197   :  { %3737 = vmatprep.subr.bf16.mxu1 %v4357_v0 }
 0x19a   :  { %3739 = vmatpush3.bf16.msra.mxu1 %v4559_v38 }
 0x19b   :  { %3740 = vmatprep.subr.bf16.mxu1 %v4357_v0 }
 0x19e   :  { %3742 = vmatpush3.bf16.msra.mxu1 %v4563_v43 }
 0x19f   :  { %3743 = vmatprep.subr.bf16.mxu1 %v4357_v0 }
 0x1a2   :  { %3745 = vmatpush3.bf16.msra.mxu1 %v4639_v14 }
 0x1a3   :  { %3746 = vmatprep.subr.bf16.mxu1 %v4357_v0 }
 0x1a6   :  { %3748 = vmatpush3.bf16.msra.mxu1 %v4644_v17 }
 0x1a7   :  { %3749 = vmatprep.subr.bf16.mxu1 %v4357_v0 }
 0x1aa   :  { %3751 = vmatpush3.bf16.msra.mxu1 %v4648_v20 }
 0x1ab   :  { %3776 = vmatprep.subr.bf16.mxu1 %v4357_v0 }
 0x240   :  { %v494_v22 = vpop.f32.mrb[0].mxu1 }
 0x241   :  { %v4192_v23 = vadd.f32 %v4750_v21, %v494_v22  ;;  %v2772_v26 = vpop.f32.mrb[1].mxu1 }
 0x243   :  { %4227 = vtanh.f32 %v4192_v23 }
 0x24d   :  { %v4753_v28 = vpop.eup %4227 }
 0x24e   :  { %2806 = vmatmul.mubr.f32.vlgmr.msra.gmra.mrb[10].mxu0 %v4753_v28 }
 0x24f   :  { %3706 = vmatpush3.bf16.msra.mxu0 %v4657_v25  ;;  %2875 = vmatprep.mubr.msk.f32.mxu0 %vm4358_vm0, %v4359_v1 }
 0x250   :  { %3707 = vmatprep.subr.bf16.mxu0 %v4357_v0 }
 0x253   :  { %3709 = vmatpush3.bf16.msra.mxu0 %v4663_v29 }
 0x254   :  { %3710 = vmatprep.subr.bf16.mxu0 %v4357_v0 }
 0x257   :  { %3712 = vmatpush3.bf16.msra.mxu0 %v4669_v32 }
 0x258   :  { %3713 = vmatprep.subr.bf16.mxu0 %v4357_v0 }
 0x25b   :  { %3715 = vmatpush3.bf16.msra.mxu0 %v4673_v36 }
 0x25c   :  { %3716 = vmatprep.subr.bf16.mxu0 %v4357_v0 }
 0x25f   :  { %3718 = vmatpush3.bf16.msra.mxu0 %v4677_v40 }
 0x260   :  { %v636_v30 = vpop.f32.mrb[2].mxu1  ;;  %3719 = vmatprep.subr.bf16.mxu0 %v4357_v0 }
 0x261   :  { %v640_v31 = vadd.f32 %v636_v30, %v4697_v56  ;;  %v2842_v34 = vpop.f32.mrb[3].mxu1 }
 0x263   :  { %4229 = vtanh.f32 %v640_v31  ;;  %3721 = vmatpush3.bf16.msra.mxu0 %v4682_v44 }
 0x264   :  { %3722 = vmatprep.subr.bf16.mxu0 %v4357_v0 }
 0x267   :  { %3724 = vmatpush3.bf16.msra.mxu0 %v4686_v50 }
 0x268   :  { %3725 = vmatprep.subr.bf16.mxu0 %v4357_v0 }
 0x26b   :  { %3727 = vmatpush3.bf16.msra.mxu0 %v4689_v52 }
 0x26c   :  { %3752 = vmatprep.subr.bf16.mxu0 %v4357_v0 }
 0x26d   :  { %v4230_v35 = vpop.eup %4229 }
 0x26e   :  { %2876 = vmatmul.mubr.f32.vlgmr.msra.gmra.mrb[10].mxu0 %v4230_v35 }
 0x26f   :  { %3754 = vmatpush3.bf16.msra.mxu0 %v4569_v45  ;;  %2945 = vmatprep.mubr.msk.f32.mxu0 %vm4358_vm0, %v4359_v1 }
 0x270   :  { %3755 = vmatprep.subr.bf16.mxu0 %v4357_v0 }
 0x273   :  { %3757 = vmatpush3.bf16.msra.mxu0 %v4578_v49 }
 0x274   :  { %3758 = vmatprep.subr.bf16.mxu0 %v4357_v0 }
 0x277   :  { %3760 = vmatpush3.bf16.msra.mxu0 %v4588_v54 }
 0x278   :  { %3761 = vmatprep.subr.bf16.mxu0 %v4357_v0 }
 0x27b   :  { %3763 = vmatpush3.bf16.msra.mxu0 %v4598_v59 }
 0x27c   :  { %3764 = vmatprep.subr.bf16.mxu0 %v4357_v0 }
 0x27f   :  { %3766 = vmatpush3.bf16.msra.mxu0 %v4605_v63 }
 0x280   :  { %3767 = vmatprep.subr.bf16.mxu0 %v4357_v0 }
 0x283   :  { %3769 = vmatpush3.bf16.msra.mxu0 %v4611_v4 }
 0x284   :  { %3770 = vmatprep.subr.bf16.mxu0 %v4357_v0 }
 0x287   :  { %3772 = vmatpush3.bf16.msra.mxu0 %v4615_v7 }
 0x288   :  { %3773 = vmatprep.subr.bf16.mxu0 %v4357_v0 }
 0x28b   :  { %3775 = vmatpush3.bf16.msra.mxu0 %v4619_v10 }
 0x28c   :  { %3800 = vmatprep.subr.bf16.mxu0 %v4357_v0 }
 0x28e   :  { %2946 = vmatmul.mubr.f32.vlgmr.msra.gmra.mrb[12].mxu0 %v4230_v35  ;;  %v2021_v35 = vld [vmem:[#allocation8 + $0x28] sm:$0xff] }
 0x28f   :  { %3802 = vmatpush3.bf16.msra.mxu0 %v4536_v24  ;;  %3015 = vmatprep.mubr.msk.f32.mxu0 %vm4358_vm0, %v4359_v1 }
 0x290   :  { %3803 = vmatprep.subr.bf16.mxu0 %v4357_v0 }
 0x293   :  { %3805 = vmatpush3.bf16.msra.mxu0 %v4542_v27 }
 0x294   :  { %3806 = vmatprep.subr.bf16.mxu0 %v4357_v0 }
 0x297   :  { %3808 = vmatpush3.bf16.msra.mxu0 %v4552_v33 }
 0x298   :  { %3809 = vmatprep.subr.bf16.mxu0 %v4357_v0 }
 0x29b   :  { %3811 = vmatpush3.bf16.msra.mxu0 %v4559_v38 }
 0x29c   :  { %3812 = vmatprep.subr.bf16.mxu0 %v4357_v0 }
 0x29f   :  { %3814 = vmatpush3.bf16.msra.mxu0 %v4563_v43 }
 0x2a0   :  { %3815 = vmatprep.subr.bf16.mxu0 %v4357_v0 }
 0x2a3   :  { %3817 = vmatpush3.bf16.msra.mxu0 %v4639_v14 }
 0x2a4   :  { %3818 = vmatprep.subr.bf16.mxu0 %v4357_v0 }
 0x2a7   :  { %3820 = vmatpush3.bf16.msra.mxu0 %v4644_v17 }
 0x2a8   :  { %3821 = vmatprep.subr.bf16.mxu0 %v4357_v0 }
 0x2ab   :  { %3823 = vmatpush3.bf16.msra.mxu0 %v4648_v20 }
 0x2ac   :  { %3848 = vmatprep.subr.bf16.mxu0 %v4357_v0 }
 0x341   :  { %v708_v37 = vpop.f32.mrb[10].mxu0 }
 0x342   :  { %v4193_v39 = vadd.f32 %v4750_v21, %v708_v37  ;;  %v2877_v41 = vpop.f32.mrb[11].mxu0  ;;  %v2022_v37 = vld [vmem:[#allocation8 + $0x30] sm:$0xff] }
 0x343   :  { %v2024_v41 = vld [vmem:[#allocation8 + $0x40] sm:$0xff] }
 0x344   :  { %4231 = vtanh.f32 %v4193_v39  ;;  %v2023_v39 = vld [vmem:[#allocation8 + $0x38] sm:$0xff] }
 0x34e   :  { %v4812_v42 = vpop.eup %4231 }
 0x34f   :  { %2911 = vmatmul.mubr.f32.vlgmr.msra.gmra.mrb[4].mxu1 %v4812_v42 }
 0x350   :  { %3778 = vmatpush3.bf16.msra.mxu1 %v4657_v25  ;;  %2980 = vmatprep.mubr.msk.f32.mxu1 %vm4358_vm0, %v4359_v1 }
 0x351   :  { %3779 = vmatprep.subr.bf16.mxu1 %v4357_v0 }
 0x354   :  { %3781 = vmatpush3.bf16.msra.mxu1 %v4663_v29 }
 0x355   :  { %3782 = vmatprep.subr.bf16.mxu1 %v4357_v0 }
 0x358   :  { %3784 = vmatpush3.bf16.msra.mxu1 %v4669_v32 }
 0x359   :  { %3785 = vmatprep.subr.bf16.mxu1 %v4357_v0 }
 0x35c   :  { %3787 = vmatpush3.bf16.msra.mxu1 %v4673_v36 }
 0x35d   :  { %3788 = vmatprep.subr.bf16.mxu1 %v4357_v0 }
 0x360   :  { %3790 = vmatpush3.bf16.msra.mxu1 %v4677_v40 }
 0x361   :  { %v851_v46 = vpop.f32.mrb[12].mxu0  ;;  %3791 = vmatprep.subr.bf16.mxu1 %v4357_v0 }
 0x362   :  { %v855_v47 = vadd.f32 %v851_v46, %v4701_v62  ;;  %v2947_v48 = vpop.f32.mrb[13].mxu0  ;;  %v2025_v46 = vld [vmem:[#allocation8 + $0x48] sm:$0xff] }
 0x363   :  { %v2027_v48 = vld [vmem:[#allocation8 + $0x58] sm:$0xff] }
 0x364   :  { %4233 = vtanh.f32 %v855_v47  ;;  %3793 = vmatpush3.bf16.msra.mxu1 %v4682_v44  ;;  %v2026_v47 = vld [vmem:[#allocation8 + $0x50] sm:$0xff] }
 0x365   :  { %3794 = vmatprep.subr.bf16.mxu1 %v4357_v0 }
 0x368   :  { %3796 = vmatpush3.bf16.msra.mxu1 %v4686_v50 }
 0x369   :  { %3797 = vmatprep.subr.bf16.mxu1 %v4357_v0 }
 0x36c   :  { %3799 = vmatpush3.bf16.msra.mxu1 %v4689_v52 }
 0x36d   :  { %3824 = vmatprep.subr.bf16.mxu1 %v4357_v0 }
 0x36e   :  { %v4234_v51 = vpop.eup %4233 }
 0x36f   :  { %2981 = vmatmul.mubr.f32.vlgmr.msra.gmra.mrb[4].mxu1 %v4234_v51 }
 0x370   :  { %3826 = vmatpush3.bf16.msra.mxu1 %v4569_v45  ;;  %3050 = vmatprep.mubr.msk.f32.mxu1 %vm4358_vm0, %v4359_v1 }
 0x371   :  { %3827 = vmatprep.subr.bf16.mxu1 %v4357_v0 }
 0x374   :  { %3829 = vmatpush3.bf16.msra.mxu1 %v4578_v49 }
 0x375   :  { %3830 = vmatprep.subr.bf16.mxu1 %v4357_v0 }
 0x378   :  { %3832 = vmatpush3.bf16.msra.mxu1 %v4588_v54 }
 0x379   :  { %3833 = vmatprep.subr.bf16.mxu1 %v4357_v0 }
 0x37c   :  { %3835 = vmatpush3.bf16.msra.mxu1 %v4598_v59 }
 0x37d   :  { %3836 = vmatprep.subr.bf16.mxu1 %v4357_v0 }
 0x380   :  { %3838 = vmatpush3.bf16.msra.mxu1 %v4605_v63 }
 0x381   :  { %3839 = vmatprep.subr.bf16.mxu1 %v4357_v0 }
 0x384   :  { %3841 = vmatpush3.bf16.msra.mxu1 %v4611_v4 }
 0x385   :  { %3842 = vmatprep.subr.bf16.mxu1 %v4357_v0 }
 0x388   :  { %3844 = vmatpush3.bf16.msra.mxu1 %v4615_v7 }
 0x389   :  { %3845 = vmatprep.subr.bf16.mxu1 %v4357_v0 }
 0x38c   :  { %3847 = vmatpush3.bf16.msra.mxu1 %v4619_v10 }
 0x38d   :  { %3872 = vmatprep.subr.bf16.mxu1 %v4357_v0 }
 0x38f   :  { %3051 = vmatmul.mubr.f32.vlgmr.msra.gmra.mrb[6].mxu1 %v4234_v51  ;;  %v4180_v51 = vpack.c.bf16 %v2027_v48, %v2026_v47 }
 0x390   :  { %3874 = vmatpush3.bf16.msra.mxu1 %v4536_v24  ;;  %3120 = vmatprep.mubr.msk.f32.mxu1 %vm4358_vm0, %v4359_v1 }
 0x391   :  { %3875 = vmatprep.subr.bf16.mxu1 %v4357_v0 }
 0x394   :  { %3877 = vmatpush3.bf16.msra.mxu1 %v4542_v27 }
 0x395   :  { %3878 = vmatprep.subr.bf16.mxu1 %v4357_v0 }
 0x398   :  { %3880 = vmatpush3.bf16.msra.mxu1 %v4552_v33 }
 0x399   :  { %3881 = vmatprep.subr.bf16.mxu1 %v4357_v0 }
 0x39c   :  { %3883 = vmatpush3.bf16.msra.mxu1 %v4559_v38 }
 0x39d   :  { %3884 = vmatprep.subr.bf16.mxu1 %v4357_v0 }
 0x3a0   :  { %3886 = vmatpush3.bf16.msra.mxu1 %v4563_v43 }
 0x3a1   :  { %3887 = vmatprep.subr.bf16.mxu1 %v4357_v0 }
 0x3a4   :  { %3889 = vmatpush3.bf16.msra.mxu1 %v4639_v14 }
 0x3a5   :  { %3890 = vmatprep.subr.bf16.mxu1 %v4357_v0 }
 0x3a8   :  { %3892 = vmatpush3.bf16.msra.mxu1 %v4644_v17 }
 0x3a9   :  { %3893 = vmatprep.subr.bf16.mxu1 %v4357_v0 }
 0x3ac   :  { %3895 = vmatpush3.bf16.msra.mxu1 %v4648_v20 }
 0x3ad   :  { %3920 = vmatprep.subr.bf16.mxu1 %v4357_v0 }
 0x442   :  { %v923_v53 = vpop.f32.mrb[4].mxu1 }
 0x443   :  { %v4194_v55 = vadd.f32 %v4750_v21, %v923_v53  ;;  %v2982_v56 = vpop.f32.mrb[5].mxu1  ;;  %v2028_v53 = vld [vmem:[#allocation8 + $0x60] sm:$0xff] }
 0x444   :  { %v2030_v56 = vld [vmem:[#allocation8 + $0x70] sm:$0xff] }
 0x445   :  { %4235 = vtanh.f32 %v4194_v55  ;;  %v2029_v55 = vld [vmem:[#allocation8 + $0x68] sm:$0xff] }
 0x44f   :  { %v4871_v57 = vpop.eup %4235 }
 0x450   :  { %3016 = vmatmul.mubr.f32.vlgmr.msra.gmra.mrb[14].mxu0 %v4871_v57 }
 0x451   :  { %3850 = vmatpush3.bf16.msra.mxu0 %v4657_v25  ;;  %3085 = vmatprep.mubr.msk.f32.mxu0 %vm4358_vm0, %v4359_v1 }
 0x452   :  { %3851 = vmatprep.subr.bf16.mxu0 %v4357_v0 }
 0x455   :  { %3853 = vmatpush3.bf16.msra.mxu0 %v4663_v29 }
 0x456   :  { %3854 = vmatprep.subr.bf16.mxu0 %v4357_v0 }
 0x459   :  { %3856 = vmatpush3.bf16.msra.mxu0 %v4669_v32 }
 0x45a   :  { %3857 = vmatprep.subr.bf16.mxu0 %v4357_v0 }
 0x45d   :  { %3859 = vmatpush3.bf16.msra.mxu0 %v4673_v36 }
 0x45e   :  { %3860 = vmatprep.subr.bf16.mxu0 %v4357_v0 }
 0x461   :  { %3862 = vmatpush3.bf16.msra.mxu0 %v4677_v40 }
 0x462   :  { %v1066_v58 = vpop.f32.mrb[6].mxu1  ;;  %3863 = vmatprep.subr.bf16.mxu0 %v4357_v0 }
 0x463   :  { %v1070_v61 = vadd.f32 %v1066_v58, %v4699_v60  ;;  %v3052_v62 = vpop.f32.mrb[7].mxu1  ;;  %v2031_v58 = vld [vmem:[#allocation8 + $0x78] sm:$0xff] }
 0x465   :  { %4237 = vtanh.f32 %v1070_v61  ;;  %3865 = vmatpush3.bf16.msra.mxu0 %v4682_v44  ;;  %v4188_v61 = vpack.c.bf16 %v2031_v58, %v2030_v56 }
 0x466   :  { %3866 = vmatprep.subr.bf16.mxu0 %v4357_v0 }
 0x469   :  { %3868 = vmatpush3.bf16.msra.mxu0 %v4686_v50 }
 0x46a   :  { %3869 = vmatprep.subr.bf16.mxu0 %v4357_v0 }
 0x46d   :  { %3871 = vmatpush3.bf16.msra.mxu0 %v4689_v52 }
 0x46e   :  { %3896 = vmatprep.subr.bf16.mxu0 %v4357_v0 }
 0x46f   :  { %v4238_v2 = vpop.eup %4237 }
 0x470   :  { %3086 = vmatmul.mubr.f32.vlgmr.msra.gmra.mrb[14].mxu0 %v4238_v2 }
 0x471   :  { %3898 = vmatpush3.bf16.msra.mxu0 %v4569_v45  ;;  %3155 = vmatprep.mubr.msk.f32.mxu0 %vm4358_vm0, %v4359_v1 }
 0x472   :  { %3899 = vmatprep.subr.bf16.mxu0 %v4357_v0 }
 0x475   :  { %3901 = vmatpush3.bf16.msra.mxu0 %v4578_v49 }
 0x476   :  { %3902 = vmatprep.subr.bf16.mxu0 %v4357_v0 }
 0x479   :  { %3904 = vmatpush3.bf16.msra.mxu0 %v4588_v54 }
 0x47a   :  { %3905 = vmatprep.subr.bf16.mxu0 %v4357_v0 }
 0x47d   :  { %3907 = vmatpush3.bf16.msra.mxu0 %v4598_v59 }
 0x47e   :  { %3908 = vmatprep.subr.bf16.mxu0 %v4357_v0 }
 0x481   :  { %3910 = vmatpush3.bf16.msra.mxu0 %v4605_v63 }
 0x482   :  { %3911 = vmatprep.subr.bf16.mxu0 %v4357_v0 }
 0x485   :  { %3913 = vmatpush3.bf16.msra.mxu0 %v4611_v4 }
 0x486   :  { %3914 = vmatprep.subr.bf16.mxu0 %v4357_v0 }
 0x489   :  { %3916 = vmatpush3.bf16.msra.mxu0 %v4615_v7 }
 0x48a   :  { %3917 = vmatprep.subr.bf16.mxu0 %v4357_v0 }
 0x48d   :  { %3919 = vmatpush3.bf16.msra.mxu0 %v4619_v10 }
 0x48e   :  { %3944 = vmatprep.subr.bf16.mxu0 %v4357_v0 }
 0x490   :  { %3156 = vmatmul.mubr.f32.vlgmr.msra.gmra.mrb[16].mxu0 %v4238_v2 }
 0x491   :  { %3946 = vmatpush3.bf16.msra.mxu0 %v4536_v24  ;;  %3225 = vmatprep.mubr.msk.f32.mxu0 %vm4358_vm0, %v4359_v1 }
 0x492   :  { %3947 = vmatprep.subr.bf16.mxu0 %v4357_v0 }
 0x495   :  { %3949 = vmatpush3.bf16.msra.mxu0 %v4542_v27 }
 0x496   :  { %3950 = vmatprep.subr.bf16.mxu0 %v4357_v0 }
 0x499   :  { %3952 = vmatpush3.bf16.msra.mxu0 %v4552_v33 }
 0x49a   :  { %3953 = vmatprep.subr.bf16.mxu0 %v4357_v0 }
 0x49d   :  { %3955 = vmatpush3.bf16.msra.mxu0 %v4559_v38 }
 0x49e   :  { %3956 = vmatprep.subr.bf16.mxu0 %v4357_v0 }
 0x4a1   :  { %3958 = vmatpush3.bf16.msra.mxu0 %v4563_v43 }
 0x4a2   :  { %3959 = vmatprep.subr.bf16.mxu0 %v4357_v0 }
 0x4a5   :  { %3961 = vmatpush3.bf16.msra.mxu0 %v4639_v14 }
 0x4a6   :  { %3962 = vmatprep.subr.bf16.mxu0 %v4357_v0 }
 0x4a9   :  { %3964 = vmatpush3.bf16.msra.mxu0 %v4644_v17 }
 0x4aa   :  { %3965 = vmatprep.subr.bf16.mxu0 %v4357_v0 }
 0x4ad   :  { %3967 = vmatpush3.bf16.msra.mxu0 %v4648_v20 }
 0x4ae   :  { %3992 = vmatprep.subr.bf16.mxu0 %v4357_v0 }
 0x543   :  { %v1138_v60 = vpop.f32.mrb[14].mxu0 }
 0x544   :  { %v4195_v5 = vadd.f32 %v4750_v21, %v1138_v60  ;;  %v3087_v8 = vpop.f32.mrb[15].mxu0 }
 0x546   :  { %4239 = vtanh.f32 %v4195_v5 }
 0x550   :  { %v4930_v11 = vpop.eup %4239 }
 0x551   :  { %3121 = vmatmul.mubr.f32.vlgmr.msra.gmra.mrb[8].mxu1 %v4930_v11 }
 0x552   :  { %3922 = vmatpush3.bf16.msra.mxu1 %v4657_v25  ;;  %3190 = vmatprep.mubr.msk.f32.mxu1 %vm4358_vm0, %v4359_v1 }
 0x553   :  { %3923 = vmatprep.subr.bf16.mxu1 %v4357_v0 }
 0x556   :  { %3925 = vmatpush3.bf16.msra.mxu1 %v4663_v29 }
 0x557   :  { %3926 = vmatprep.subr.bf16.mxu1 %v4357_v0 }
 0x55a   :  { %3928 = vmatpush3.bf16.msra.mxu1 %v4669_v32 }
 0x55b   :  { %3929 = vmatprep.subr.bf16.mxu1 %v4357_v0 }
 0x55e   :  { %3931 = vmatpush3.bf16.msra.mxu1 %v4673_v36 }
 0x55f   :  { %3932 = vmatprep.subr.bf16.mxu1 %v4357_v0 }
 0x562   :  { %3934 = vmatpush3.bf16.msra.mxu1 %v4677_v40 }
 0x563   :  { %v1281_v13 = vpop.f32.mrb[16].mxu0  ;;  %3935 = vmatprep.subr.bf16.mxu1 %v4357_v0 }
 0x564   :  { %v1285_v15 = vadd.f32 %v1281_v13, %v4705_v6  ;;  %v3157_v16 = vpop.f32.mrb[17].mxu0 }
 0x566   :  { %4241 = vtanh.f32 %v1285_v15  ;;  %3937 = vmatpush3.bf16.msra.mxu1 %v4682_v44 }
 0x567   :  { %3938 = vmatprep.subr.bf16.mxu1 %v4357_v0 }
 0x56a   :  { %3940 = vmatpush3.bf16.msra.mxu1 %v4686_v50 }
 0x56b   :  { %3941 = vmatprep.subr.bf16.mxu1 %v4357_v0 }
 0x56e   :  { %3943 = vmatpush3.bf16.msra.mxu1 %v4689_v52 }
 0x56f   :  { %3968 = vmatprep.subr.bf16.mxu1 %v4357_v0 }
 0x570   :  { %v4242_v18 = vpop.eup %4241 }
 0x571   :  { %3191 = vmatmul.mubr.f32.vlgmr.msra.gmra.mrb[8].mxu1 %v4242_v18 }
 0x572   :  { %3970 = vmatpush3.bf16.msra.mxu1 %v4569_v45  ;;  %3260 = vmatprep.mubr.msk.f32.mxu1 %vm4358_vm0, %v4359_v1 }
 0x573   :  { %3971 = vmatprep.subr.bf16.mxu1 %v4357_v0 }
 0x576   :  { %3973 = vmatpush3.bf16.msra.mxu1 %v4578_v49 }
 0x577   :  { %3974 = vmatprep.subr.bf16.mxu1 %v4357_v0 }
 0x57a   :  { %3976 = vmatpush3.bf16.msra.mxu1 %v4588_v54 }
 0x57b   :  { %3977 = vmatprep.subr.bf16.mxu1 %v4357_v0 }
 0x57e   :  { %3979 = vmatpush3.bf16.msra.mxu1 %v4598_v59 }
 0x57f   :  { %3980 = vmatprep.subr.bf16.mxu1 %v4357_v0 }
 0x582   :  { %3982 = vmatpush3.bf16.msra.mxu1 %v4605_v63 }
 0x583   :  { %3983 = vmatprep.subr.bf16.mxu1 %v4357_v0 }
 0x586   :  { %3985 = vmatpush3.bf16.msra.mxu1 %v4611_v4 }
 0x587   :  { %3986 = vmatprep.subr.bf16.mxu1 %v4357_v0 }
 0x58a   :  { %3988 = vmatpush3.bf16.msra.mxu1 %v4615_v7 }
 0x58b   :  { %3989 = vmatprep.subr.bf16.mxu1 %v4357_v0 }
 0x58e   :  { %3991 = vmatpush3.bf16.msra.mxu1 %v4619_v10 }
 0x58f   :  { %4016 = vmatprep.subr.bf16.mxu1 %v4357_v0 }
 0x591   :  { %3261 = vmatmul.mubr.f32.vlgmr.msra.gmra.mrb[10].mxu1 %v4242_v18 }
 0x592   :  { %4018 = vmatpush3.bf16.msra.mxu1 %v4536_v24  ;;  %3330 = vmatprep.mubr.msk.f32.mxu1 %vm4358_vm0, %v4359_v1 }
 0x593   :  { %4019 = vmatprep.subr.bf16.mxu1 %v4357_v0 }
 0x596   :  { %4021 = vmatpush3.bf16.msra.mxu1 %v4542_v27 }
 0x597   :  { %4022 = vmatprep.subr.bf16.mxu1 %v4357_v0 }
 0x59a   :  { %4024 = vmatpush3.bf16.msra.mxu1 %v4552_v33 }
 0x59b   :  { %4025 = vmatprep.subr.bf16.mxu1 %v4357_v0 }
 0x59e   :  { %4027 = vmatpush3.bf16.msra.mxu1 %v4559_v38 }
 0x59f   :  { %4028 = vmatprep.subr.bf16.mxu1 %v4357_v0 }
 0x5a2   :  { %4030 = vmatpush3.bf16.msra.mxu1 %v4563_v43 }
 0x5a3   :  { %4031 = vmatprep.subr.bf16.mxu1 %v4357_v0 }
 0x5a6   :  { %4033 = vmatpush3.bf16.msra.mxu1 %v4639_v14 }
 0x5a7   :  { %4034 = vmatprep.subr.bf16.mxu1 %v4357_v0 }
 0x5aa   :  { %4036 = vmatpush3.bf16.msra.mxu1 %v4644_v17 }
 0x5ab   :  { %4037 = vmatprep.subr.bf16.mxu1 %v4357_v0 }
 0x5ae   :  { %4039 = vmatpush3.bf16.msra.mxu1 %v4648_v20 }
 0x5af   :  { %4064 = vmatprep.subr.bf16.mxu1 %v4357_v0 }
 0x644   :  { %v1353_v6 = vpop.f32.mrb[8].mxu1 }
 0x645   :  { %v4196_v19 = vadd.f32 %v4750_v21, %v1353_v6  ;;  %v3192_v22 = vpop.f32.mrb[9].mxu1 }
 0x647   :  { %4243 = vtanh.f32 %v4196_v19 }
 0x651   :  { %v4989_v23 = vpop.eup %4243 }
 0x652   :  { %3226 = vmatmul.mubr.f32.vlgmr.msra.gmra.mrb[18].mxu0 %v4989_v23 }
 0x653   :  { %3994 = vmatpush3.bf16.msra.mxu0 %v4657_v25  ;;  %3295 = vmatprep.mubr.msk.f32.mxu0 %vm4358_vm0, %v4359_v1 }
 0x654   :  { %3995 = vmatprep.subr.bf16.mxu0 %v4357_v0 }
 0x657   :  { %3997 = vmatpush3.bf16.msra.mxu0 %v4663_v29 }
 0x658   :  { %3998 = vmatprep.subr.bf16.mxu0 %v4357_v0 }
 0x65b   :  { %4000 = vmatpush3.bf16.msra.mxu0 %v4669_v32 }
 0x65c   :  { %4001 = vmatprep.subr.bf16.mxu0 %v4357_v0 }
 0x65f   :  { %4003 = vmatpush3.bf16.msra.mxu0 %v4673_v36 }
 0x660   :  { %4004 = vmatprep.subr.bf16.mxu0 %v4357_v0 }
 0x663   :  { %4006 = vmatpush3.bf16.msra.mxu0 %v4677_v40 }
 0x664   :  { %v1496_v26 = vpop.f32.mrb[10].mxu1  ;;  %4007 = vmatprep.subr.bf16.mxu0 %v4357_v0 }
 0x665   :  { %v1500_v30 = vadd.f32 %v1496_v26, %v4703_v3  ;;  %v3262_v31 = vpop.f32.mrb[11].mxu1  ;;  %v2018_v3 = vld [vmem:[#allocation8 + $0x10] sm:$0xff] }
 0x667   :  { %4245 = vtanh.f32 %v1500_v30  ;;  %4009 = vmatpush3.bf16.msra.mxu0 %v4682_v44 }
 0x668   :  { %4010 = vmatprep.subr.bf16.mxu0 %v4357_v0 }
 0x66b   :  { %4012 = vmatpush3.bf16.msra.mxu0 %v4686_v50 }
 0x66c   :  { %4013 = vmatprep.subr.bf16.mxu0 %v4357_v0 }
 0x66f   :  { %4015 = vmatpush3.bf16.msra.mxu0 %v4689_v52 }
 0x670   :  { %4040 = vmatprep.subr.bf16.mxu0 %v4357_v0 }
 0x671   :  { %v4246_v34 = vpop.eup %4245 }
 0x672   :  { %3296 = vmatmul.mubr.f32.vlgmr.msra.gmra.mrb[18].mxu0 %v4246_v34 }
 0x673   :  { %4042 = vmatpush3.bf16.msra.mxu0 %v4569_v45  ;;  %3365 = vmatprep.mubr.msk.f32.mxu0 %vm4358_vm0, %v4359_v1 }
 0x674   :  { %4043 = vmatprep.subr.bf16.mxu0 %v4357_v0 }
 0x677   :  { %4045 = vmatpush3.bf16.msra.mxu0 %v4578_v49 }
 0x678   :  { %4046 = vmatprep.subr.bf16.mxu0 %v4357_v0 }
 0x67b   :  { %4048 = vmatpush3.bf16.msra.mxu0 %v4588_v54 }
 0x67c   :  { %4049 = vmatprep.subr.bf16.mxu0 %v4357_v0 }
 0x67f   :  { %4051 = vmatpush3.bf16.msra.mxu0 %v4598_v59 }
 0x680   :  { %4052 = vmatprep.subr.bf16.mxu0 %v4357_v0 }
 0x683   :  { %4054 = vmatpush3.bf16.msra.mxu0 %v4605_v63 }
 0x684   :  { %4055 = vmatprep.subr.bf16.mxu0 %v4357_v0 }
 0x687   :  { %4057 = vmatpush3.bf16.msra.mxu0 %v4611_v4 }
 0x688   :  { %4058 = vmatprep.subr.bf16.mxu0 %v4357_v0 }
 0x68b   :  { %4060 = vmatpush3.bf16.msra.mxu0 %v4615_v7 }
 0x68c   :  { %4061 = vmatprep.subr.bf16.mxu0 %v4357_v0 }
 0x68f   :  { %4063 = vmatpush3.bf16.msra.mxu0 %v4619_v10 }
 0x690   :  { %4088 = vmatprep.subr.bf16.mxu0 %v4357_v0 }
 0x692   :  { %3366 = vmatmul.mubr.f32.vlgmr.msra.gmra.mrb[20].mxu0 %v4246_v34 }
 0x693   :  { %4090 = vmatpush3.bf16.msra.mxu0 %v4536_v24  ;;  %3435 = vmatprep.mubr.msk.f32.mxu0 %vm4358_vm0, %v4359_v1 }
 0x694   :  { %4091 = vmatprep.subr.bf16.mxu0 %v4357_v0 }
 0x697   :  { %4093 = vmatpush3.bf16.msra.mxu0 %v4542_v27 }
 0x698   :  { %4094 = vmatprep.subr.bf16.mxu0 %v4357_v0 }
 0x69b   :  { %4096 = vmatpush3.bf16.msra.mxu0 %v4552_v33 }
 0x69c   :  { %4097 = vmatprep.subr.bf16.mxu0 %v4357_v0 }
 0x69f   :  { %4099 = vmatpush3.bf16.msra.mxu0 %v4559_v38 }
 0x6a0   :  { %4100 = vmatprep.subr.bf16.mxu0 %v4357_v0 }
 0x6a3   :  { %4102 = vmatpush3.bf16.msra.mxu0 %v4563_v43 }
 0x6a4   :  { %4103 = vmatprep.subr.bf16.mxu0 %v4357_v0 }
 0x6a7   :  { %4105 = vmatpush3.bf16.msra.mxu0 %v4639_v14 }
 0x6a8   :  { %4106 = vmatprep.subr.bf16.mxu0 %v4357_v0 }
 0x6ab   :  { %4108 = vmatpush3.bf16.msra.mxu0 %v4644_v17 }
 0x6ac   :  { %4109 = vmatprep.subr.bf16.mxu0 %v4357_v0 }
 0x6af   :  { %4111 = vmatpush3.bf16.msra.mxu0 %v4648_v20 }
 0x6b0   :  { %4136 = vmatprep.subr.bf16.mxu0 %v4357_v0 }
 0x745   :  { %v1568_v24 = vpop.f32.mrb[18].mxu0 }
 0x746   :  { %v4197_v27 = vadd.f32 %v4750_v21, %v1568_v24  ;;  %v3297_v33 = vpop.f32.mrb[19].mxu0 }
 0x748   :  { %4247 = vtanh.f32 %v4197_v27 }
 0x752   :  { %v5048_v38 = vpop.eup %4247 }
 0x753   :  { %3331 = vmatmul.mubr.f32.vlgmr.msra.gmra.mrb[12].mxu1 %v5048_v38 }
 0x754   :  { %4066 = vmatpush3.bf16.msra.mxu1 %v4657_v25  ;;  %3400 = vmatprep.mubr.msk.f32.mxu1 %vm4358_vm0, %v4359_v1 }
 0x755   :  { %4067 = vmatprep.subr.bf16.mxu1 %v4357_v0 }
 0x758   :  { %4069 = vmatpush3.bf16.msra.mxu1 %v4663_v29 }
 0x759   :  { %4070 = vmatprep.subr.bf16.mxu1 %v4357_v0 }
 0x75c   :  { %4072 = vmatpush3.bf16.msra.mxu1 %v4669_v32 }
 0x75d   :  { %4073 = vmatprep.subr.bf16.mxu1 %v4357_v0 }
 0x760   :  { %4075 = vmatpush3.bf16.msra.mxu1 %v4673_v36 }
 0x761   :  { %4076 = vmatprep.subr.bf16.mxu1 %v4357_v0 }
 0x764   :  { %4078 = vmatpush3.bf16.msra.mxu1 %v4677_v40 }
 0x765   :  { %v1711_v43 = vpop.f32.mrb[20].mxu0  ;;  %4079 = vmatprep.subr.bf16.mxu1 %v4357_v0 }
 0x766   :  { %v1715_v14 = vadd.f32 %v1711_v43, %v4709_v12  ;;  %v3367_v17 = vpop.f32.mrb[21].mxu0  ;;  %v2019_v12 = vld [vmem:[#allocation8 + $0x18] sm:$0xff] }
 0x768   :  { %4249 = vtanh.f32 %v1715_v14  ;;  %4081 = vmatpush3.bf16.msra.mxu1 %v4682_v44 }
 0x769   :  { %4082 = vmatprep.subr.bf16.mxu1 %v4357_v0 }
 0x76c   :  { %4084 = vmatpush3.bf16.msra.mxu1 %v4686_v50 }
 0x76d   :  { %4085 = vmatprep.subr.bf16.mxu1 %v4357_v0 }
 0x770   :  { %4087 = vmatpush3.bf16.msra.mxu1 %v4689_v52 }
 0x771   :  { %4112 = vmatprep.subr.bf16.mxu1 %v4357_v0 }
 0x772   :  { %v4250_v20 = vpop.eup %4249 }
 0x773   :  { %3401 = vmatmul.mubr.f32.vlgmr.msra.gmra.mrb[12].mxu1 %v4250_v20 }
 0x774   :  { %4114 = vmatpush3.bf16.msra.mxu1 %v4569_v45  ;;  %3470 = vmatprep.mubr.msk.f32.mxu1 %vm4358_vm0, %v4359_v1  ;;  %v2016_v45 = vld [vmem:[#allocation8] sm:$0xff] }
 0x775   :  { %4115 = vmatprep.subr.bf16.mxu1 %v4357_v0 }
 0x778   :  { %4117 = vmatpush3.bf16.msra.mxu1 %v4578_v49  ;;  %v2017_v49 = vld [vmem:[#allocation8 + $0x8] sm:$0xff] }
 0x779   :  { %4118 = vmatprep.subr.bf16.mxu1 %v4357_v0 }
 0x77c   :  { %4120 = vmatpush3.bf16.msra.mxu1 %v4588_v54  ;;  %v4160_v54 = vpack.c.bf16 %v2017_v49, %v2016_v45 }
 0x77d   :  { %4121 = vmatprep.subr.bf16.mxu1 %v4357_v0 }
 0x780   :  { %4123 = vmatpush3.bf16.msra.mxu1 %v4598_v59  ;;  %v4164_v59 = vpack.c.bf16 %v2019_v12, %v2018_v3 }
 0x781   :  { %4124 = vmatprep.subr.bf16.mxu1 %v4357_v0 }
 0x784   :  { %4126 = vmatpush3.bf16.msra.mxu1 %v4605_v63  ;;  %v2020_v63 = vld [vmem:[#allocation8 + $0x20] sm:$0xff] }
 0x785   :  { %4127 = vmatprep.subr.bf16.mxu1 %v4357_v0 }
 0x788   :  { %4129 = vmatpush3.bf16.msra.mxu1 %v4611_v4  ;;  %v4168_v4 = vpack.c.bf16 %v2021_v35, %v2020_v63 }
 0x789   :  { %4130 = vmatprep.subr.bf16.mxu1 %v4357_v0 }
 0x78c   :  { %4132 = vmatpush3.bf16.msra.mxu1 %v4615_v7  ;;  %v4172_v7 = vpack.c.bf16 %v2023_v39, %v2022_v37 }
 0x78d   :  { %4133 = vmatprep.subr.bf16.mxu1 %v4357_v0 }
 0x790   :  { %4135 = vmatpush3.bf16.msra.mxu1 %v4619_v10  ;;  %v4176_v10 = vpack.c.bf16 %v2025_v46, %v2024_v41 }
 0x791   :  { %4161 = vmatprep.subr.bf16.mxu1 %v4160_v54 }
 0x793   :  { %3471 = vmatmul.mubr.f32.vlgmr.msra.gmra.mrb[14].mxu1 %v4250_v20 }
 0x794   :  { %4163 = vmatpush3.bf16.msra.mxu1 %v4160_v54  ;;  %3540 = vmatprep.mubr.f32.mxu1 %v4753_v28  ;;  %v4184_v28 = vpack.c.bf16 %v2029_v55, %v2028_v53 }
 0x795   :  { %4165 = vmatprep.subr.bf16.mxu1 %v4164_v59 }
 0x798   :  { %4167 = vmatpush3.bf16.msra.mxu1 %v4164_v59 }
 0x799   :  { %4169 = vmatprep.subr.bf16.mxu1 %v4168_v4 }
 0x79c   :  { %4171 = vmatpush3.bf16.msra.mxu1 %v4168_v4 }
 0x79d   :  { %4173 = vmatprep.subr.bf16.mxu1 %v4172_v7 }
 0x7a0   :  { %4175 = vmatpush3.bf16.msra.mxu1 %v4172_v7 }
 0x7a1   :  { %4177 = vmatprep.subr.bf16.mxu1 %v4176_v10 }
 0x7a4   :  { %4179 = vmatpush3.bf16.msra.mxu1 %v4176_v10 }
 0x7a5   :  { %4181 = vmatprep.subr.bf16.mxu1 %v4180_v51 }
 0x7a8   :  { %4183 = vmatpush3.bf16.msra.mxu1 %v4180_v51 }
 0x7a9   :  { %4185 = vmatprep.subr.bf16.mxu1 %v4184_v28 }
 0x7ac   :  { %4187 = vmatpush3.bf16.msra.mxu1 %v4184_v28 }
 0x7ad   :  { %4189 = vmatprep.subr.bf16.mxu1 %v4188_v61 }
 0x7b0   :  { %4191 = vmatpush3.bf16.msra.mxu1 %v4188_v61 }
 0x7b3   :  { %3541 = vmatmul.mubr.f32.vlgmr.msra.gmra.mrb[16].mxu1 %v4812_v42 }
 0x7b4   :  { %3543 = vmatprep.mubr.f32.mxu1 %v4871_v57 }
 0x7b7   :  { %3544 = vmatmul.mubr.f32.gmra.mrb[18].mxu1 %v4930_v11 }
 0x7b8   :  { %3546 = vmatprep.mubr.f32.mxu1 %v4989_v23 }
 0x7bb   :  { %3547 = vmatmul.mubr.f32.gmra.mrb[20].mxu1 %v5048_v38 }
 0x846   :  { %v1783_v62 = vpop.f32.mrb[12].mxu1 }
 0x847   :  { %v4198_v2 = vadd.f32 %v4750_v21, %v1783_v62  ;;  %v3402_v60 = vpop.f32.mrb[13].mxu1 }
 0x849   :  { %4251 = vtanh.f32 %v4198_v2 }
 0x853   :  { %v4252_v5 = vpop.eup %4251 }
 0x854   :  { %3436 = vmatmul.mubr.f32.vlgmr.msra.gmra.mrb[22].mxu0 %v4252_v5  ;;  %3549 = vmatprep.mubr.f32.mxu1 %v4252_v5 }
 0x855   :  { %4138 = vmatpush3.bf16.msra.mxu0 %v4657_v25  ;;  %3505 = vmatprep.mubr.msk.f32.mxu0 %vm4358_vm0, %v4359_v1 }
 0x856   :  { %4139 = vmatprep.subr.bf16.mxu0 %v4357_v0 }
 0x859   :  { %4141 = vmatpush3.bf16.msra.mxu0 %v4663_v29 }
 0x85a   :  { %4142 = vmatprep.subr.bf16.mxu0 %v4357_v0 }
 0x85d   :  { %4144 = vmatpush3.bf16.msra.mxu0 %v4669_v32  ;;  %v2167_v32 = vld [vmem:[%s5155_s9] ss:$0 sm:$0xff] }
 0x85e   :  { %4145 = vmatprep.subr.bf16.mxu0 %v4357_v0 }
 0x861   :  { %4147 = vmatpush3.bf16.msra.mxu0 %v4673_v36 }
 0x862   :  { %4148 = vmatprep.subr.bf16.mxu0 %v4357_v0 }
 0x865   :  { %4150 = vmatpush3.bf16.msra.mxu0 %v4677_v40 }
 0x866   :  { %v1926_v25 = vpop.f32.mrb[14].mxu1  ;;  %4151 = vmatprep.subr.bf16.mxu0 %v4357_v0 }
 0x867   :  { %v1930_v1 = vadd.f32 %v1926_v25, %v4707_v9  ;;  %v3472_v42 = vpop.f32.mrb[15].mxu1 }
 0x869   :  { %4253 = vtanh.f32 %v1930_v1  ;;  %4153 = vmatpush3.bf16.msra.mxu0 %v4682_v44 }
 0x86a   :  { %4154 = vmatprep.subr.bf16.mxu0 %v4357_v0 }
 0x86d   :  { %4156 = vmatpush3.bf16.msra.mxu0 %v4686_v50 }
 0x86e   :  { %4157 = vmatprep.subr.bf16.mxu0 %v4357_v0 }
 0x871   :  { %4159 = vmatpush3.bf16.msra.mxu0 %v4689_v52 }
 0x873   :  { %v4254_v29 = vpop.eup %4253 }
 0x874   :  { %2005 = vst [vmem:[%s5157_s11] sm:$0xff] %v4254_v29  ;;  %3506 = vmatmul.mubr.f32.vlgmr.msra.gmra.mrb[22].mxu0 %v4254_v29 }
 0x886   :  { %v3542_v36 = vpop.f32.mrb[16].mxu1 }
 0x887   :  { %v2111_v40 = vadd.f32 %v3542_v36, %v2167_v32  ;;  %v2105_v44 = vpop.f32.mrb[17].mxu1 }
 0x888   :  { %v2106_v9 = vadd.f32 %v2167_v32, %v2105_v44 }
 0x889   :  { %2145 = vst [vmem:[%s5156_s10 + $0x8] sm:$0xff] %v2111_v40 }
 0x88a   :  { %2144 = vst [vmem:[%s5156_s10] sm:$0xff] %v2106_v9  ;;  %v3545_v0 = vpop.f32.mrb[18].mxu1 }
 0x88b   :  { %v2121_v50 = vadd.f32 %v3545_v0, %v2167_v32  ;;  %v2115_v52 = vpop.f32.mrb[19].mxu1 }
 0x88c   :  { %v2116_v57 = vadd.f32 %v2167_v32, %v2115_v52 }
 0x88d   :  { %2147 = vst [vmem:[%s5156_s10 + $0x18] sm:$0xff] %v2121_v50 }
 0x88e   :  { %2146 = vst [vmem:[%s5156_s10 + $0x10] sm:$0xff] %v2116_v57  ;;  %v3548_v8 = vpop.f32.mrb[20].mxu1 }
 0x88f   :  { %v2131_v11 = vadd.f32 %v3548_v8, %v2167_v32  ;;  %v2125_v13 = vpop.f32.mrb[21].mxu1 }
 0x890   :  { %v2126_v15 = vadd.f32 %v2167_v32, %v2125_v13 }
 0x891   :  { %2149 = vst [vmem:[%s5156_s10 + $0x28] sm:$0xff] %v2131_v11 }
 0x892   :  { %2148 = vst [vmem:[%s5156_s10 + $0x20] sm:$0xff] %v2126_v15 }
 0x947   :  { %v1998_v16 = vpop.f32.mrb[22].mxu0 }
 0x948   :  { %v4199_v18 = vadd.f32 %v4750_v21, %v1998_v16  ;;  %v3507_v6 = vpop.f32.mrb[23].mxu0 }
 0x94a   :  { %4255 = vtanh.f32 %v4199_v18 }
 0x954   :  { %v4256_v19 = vpop.eup %4255 }
 0x955   :  { %2166 = vst [vmem:[%s5157_s11 + $0x8] sm:$0xff] %v4256_v19  ;;  %3550 = vmatmul.mubr.f32.gmra.mrb[22].mxu1 %v4256_v19 }
 0xa28   :  { %v3551_v22 = vpop.f32.mrb[22].mxu1 }
 0xa29   :  { %v2141_v23 = vadd.f32 %v3551_v22, %v2167_v32  ;;  %v2135_v26 = vpop.f32.mrb[23].mxu1 }
 0xa2a   :  { %v2136_v30 = vadd.f32 %v2167_v32, %v2135_v26 }
 0xa2b   :  { %2151 = vst [vmem:[%s5156_s10 + $0x38] sm:$0xff] %v2141_v23 }
 0xa2c   :  { %2150 = vst [vmem:[%s5156_s10 + $0x30] sm:$0xff] %v2136_v30 }
 0xa2d   :  { %2160 = vsyncpa [#allocation4], 1 }
 0xa2e   :  { %2161 = vsyncpa [#allocation6], 1 }
 0xa2f   :  { %2162 = vsyncpa [#allocation9], 1 }

</bundles_post_ra>
